<compile_context>
chip_gen: v7x
topology: tpu7x:2x2x1
jax: 0.10.0
libtpu: 0.0.40
codegen_flags: <defaults>
</compile_context>

<pallas_src>
import jax
import jax.numpy as jnp
from jax.experimental import pallas as pl
from jax.experimental.pallas import tpu as pltpu

DEFAULT_TILE_N = 1024                      # rows per grid step (amortizes ~0.35us/step)
_VMEM_BUDGET_BYTES = 24 * 1024 * 1024      # conservative: also fits v7x's smaller VMEM


def _elbo_nc_kernel(counts_ref,            # SMEM (2,) int32: [n_obs, n_miss]
                    logp_ref, logq_ref,    # VMEM (tile_n, C) float
                    meta_ref,              # VMEM (tile_n, 1) int32: label / -1 miss / -2 pad
                    out_ref,               # VMEM (1, 1) f32
                    acc_ref):              # VMEM (tile_n, C) f32 accumulator scratch
    i = pl.program_id(0)

    @pl.when(i == 0)
    def _init():
        acc_ref[...] = jnp.zeros_like(acc_ref)
        out_ref[...] = jnp.zeros_like(out_ref)   # cheap insurance against stale writeback

    meta = meta_ref[...]                              # (tile_n, 1) int32
    obs_f = (meta >= 0).astype(jnp.float32)           # observed (train) rows
    miss_f = (meta == -1).astype(jnp.float32)         # missing rows
    valid = meta >= -1                                # not a padding / garbage row

    # Kill garbage rows (unpadded last partial block) BEFORE exp / multiply so no
    # NaN/Inf from uninitialized VMEM can leak into the accumulator.
    logp = jnp.where(valid, logp_ref[...].astype(jnp.float32), 0.0)
    logq = jnp.where(valid, logq_ref[...].astype(jnp.float32), 0.0)

    tn, c = logp.shape
    onehot = (jax.lax.broadcasted_iota(jnp.int32, (tn, c), 1) == meta).astype(jnp.float32)

    # Per-row weights with the means' denominators folded in (counts from wrapper).
    # Intentionally no zero guard: empty obs/miss set -> NaN, matching PyTorch's
    # empty-mean behavior.
    n_obs_f = counts_ref[0].astype(jnp.float32)
    n_miss_el_f = (counts_ref[1] * c).astype(jnp.float32)
    w_obs = obs_f / n_obs_f                            # (tile_n, 1)
    w_miss = miss_f / n_miss_el_f                      # (tile_n, 1)

    q = jnp.exp(logq)                                  # <= 1 for valid rows, 1 for masked rows
    contrib = (onehot * (-(logp + 10.0 * logq))) * w_obs + (q * (logq - logp)) * w_miss
    acc_ref[...] += contrib                            # pure elementwise; no XLU in the loop

    @pl.when(i == pl.num_programs(0) - 1)
    def _finalize():
        out_ref[...] = jnp.sum(acc_ref[...], axis=(0, 1), keepdims=True)


def elbo_nc_loss(log_p_y, log_q_y, label, train_mask, *, tile_n=DEFAULT_TILE_N):
    """ELBONCLoss forward.

    log_p_y, log_q_y : float [N, C] log-probabilities (f32 or bf16)
    label            : int   [N]   class index per node
    train_mask       : bool  [N]   True = observed (train) node
    """
    n, c = log_p_y.shape
    itemsize = jnp.dtype(log_p_y.dtype).itemsize

    # ---- tile sizing: as big as fits a conservative VMEM budget (v5e/v6e/v7x) ----
    c_lanes = ((c + 127) // 128) * 128                 # lane-padded class dim
    # 2 inputs x 2 pipeline buffers + resident f32 accumulator + metadata column buffers
    bytes_per_row = (2 * 2 * itemsize + 4) * c_lanes + 2 * 4 * 128
    tile_cap = max(8, (_VMEM_BUDGET_BYTES // bytes_per_row) // 8 * 8)
    tile_n = min(tile_n, tile_cap)
    tile_n = min(tile_n, ((n + 7) // 8) * 8)           # no point tiling past the data
    tile_n = max(8, (tile_n // 8) * 8)                 # sublane-aligned

    num_blocks = pl.cdiv(n, tile_n)
    n_pad = num_blocks * tile_n

    # ---- per-row metadata: single int32 column (label for obs / -1 miss / -2 pad) ----
    obs = train_mask.astype(jnp.bool_)
    meta = jnp.where(obs, label.astype(jnp.int32), jnp.int32(-1))
    if n_pad != n:
        # Only this tiny [N] int32 column gets padded; the big [N, C] arrays are
        # streamed unpadded (the last partial block's garbage rows are masked in-kernel).
        meta = jnp.pad(meta, ((0, n_pad - n),), constant_values=-2)
    meta2 = meta.reshape(n_pad, 1)

    # ---- scalar counts (trivially fused by XLA; removes two in-kernel reductions) ----
    n_obs = jnp.sum(obs.astype(jnp.int32))
    counts = jnp.stack([n_obs, jnp.asarray(n, jnp.int32) - n_obs]).astype(jnp.int32)

    out = pl.pallas_call(
        _elbo_nc_kernel,
        out_shape=jax.ShapeDtypeStruct((1, 1), jnp.float32),
        grid_spec=pltpu.PrefetchScalarGridSpec(
            num_scalar_prefetch=1,
            grid=(num_blocks,),
            in_specs=[
                pl.BlockSpec((tile_n, c), lambda i, cnt: (i, 0)),
                pl.BlockSpec((tile_n, c), lambda i, cnt: (i, 0)),
                pl.BlockSpec((tile_n, 1), lambda i, cnt: (i, 0)),
            ],
            out_specs=pl.BlockSpec((1, 1), lambda i, cnt: (0, 0)),
            scratch_shapes=[pltpu.VMEM((tile_n, c), jnp.float32)],
        ),
        compiler_params=pltpu.CompilerParams(
            dimension_semantics=("arbitrary",),        # reduction axis (accumulator-carried)
            vmem_limit_bytes=32 * 1024 * 1024,         # covers the budget on v5e too
        ),
    )(counts, log_p_y, log_q_y, meta2)
    return out[0, 0]


if __name__ == "__main__":
    key = jax.random.PRNGKey(0)
    n, c = 200, 8  # N graph nodes, C classes
    k1, k2, k3, k4 = jax.random.split(key, 4)

    log_p_y = jax.nn.log_softmax(jax.random.normal(k1, (n, c), jnp.float32), axis=-1)
    log_q_y = jax.nn.log_softmax(jax.random.normal(k2, (n, c), jnp.float32), axis=-1)
    label = jax.random.randint(k3, (n, 1), 0, c)          # like data.label, shape [N, 1]
    train_mask = jax.random.bernoulli(k4, 0.5, (n,))      # like data.node_mask['train_mask']

    # eager JAX reference matching the PyTorch boolean-indexing semantics
    y_obs = label.squeeze(1)[train_mask]
    lp_obs, lp_miss = log_p_y[train_mask], log_p_y[~train_mask]
    lq_obs, lq_miss = log_q_y[train_mask], log_q_y[~train_mask]
    q_miss = jnp.exp(lq_miss)
    rows = jnp.arange(y_obs.shape[0])
    nll_p = -jnp.mean(lp_obs[rows, y_obs])
    nll_q = -jnp.mean(lq_obs[rows, y_obs])
    ref = (nll_p - jnp.mean(q_miss * lp_miss)) + jnp.mean(q_miss * lq_miss) + 10.0 * nll_q

    # default tile: one block covering all rows
    loss_big = jax.block_until_ready(
        elbo_nc_loss(log_p_y, log_q_y, label.squeeze(1), train_mask))
    # small tile: 4 grid steps incl. an unpadded partial last block (exercises masking path)
    loss_small = jax.block_until_ready(
        elbo_nc_loss(log_p_y, log_q_y, label.squeeze(1), train_mask, tile_n=64))

    assert jnp.allclose(loss_big, ref, atol=1e-5, rtol=1e-5), (float(loss_big), float(ref))
    assert jnp.allclose(loss_small, ref, atol=1e-5, rtol=1e-5), (float(loss_small), float(ref))
    print("KERNEL_OK")
</pallas_src>

<mosaic_0001>
module attributes {stable_mosaic.version = 11 : i64} {
  func.func @_elbo_nc_kernel(%arg0: i32, %arg1: memref<2xi32, #tpu.memory_space<smem>>, %arg2: memref<200x8xf32, #tpu.memory_space<vmem>>, %arg3: memref<200x8xf32, #tpu.memory_space<vmem>>, %arg4: memref<200x1xi32, #tpu.memory_space<vmem>>, %arg5: memref<1x1xf32, #tpu.memory_space<vmem>>, %arg6: memref<200x8xf32, #tpu.memory_space<vmem>>) attributes {dimension_semantics = [#tpu.dimension_semantics<arbitrary>], iteration_bounds = array<i64: 1>, scalar_prefetch = 1 : i64, scratch_operands = 1 : i64, tpu.core_type = #tpu.core_type<tc>, window_params = [{transform_indices = @transform_0, window_bounds = array<i64: 200, 8>}, {transform_indices = @transform_1, window_bounds = array<i64: 200, 8>}, {transform_indices = @transform_2, window_bounds = array<i64: 200, 1>}, {pipeline_mode = #tpu.pipeline_mode<synchronous>, transform_indices = @transform_3, window_bounds = array<i64: 1, 1>}]} {
    %c0_i32 = arith.constant 0 : i32
    %0 = arith.cmpi eq, %arg0, %c0_i32 : i32
    %1 = arith.extui %0 : i1 to i32
    %c0_i32_0 = arith.constant 0 : i32
    %2 = arith.cmpi ne, %1, %c0_i32_0 : i32
    scf.if %2 {
      %cst_18 = arith.constant 0.000000e+00 : f32
      %58 = vector.broadcast %cst_18 : f32 to vector<200x8xf32>
      %c0_19 = arith.constant 0 : index
      %c0_20 = arith.constant 0 : index
      %59 = vector.load %arg6[%c0_19, %c0_20] : memref<200x8xf32, #tpu.memory_space<vmem>>, vector<200x8xf32>
      tpu.vector_store %arg6[%c0_19, %c0_20], %58 {strides = array<i32>} : memref<200x8xf32, #tpu.memory_space<vmem>>, vector<200x8xf32>,
      %cst_21 = arith.constant 0.000000e+00 : f32
      %60 = vector.broadcast %cst_21 : f32 to vector<1x1xf32>
      %c0_22 = arith.constant 0 : index
      %c0_23 = arith.constant 0 : index
      %61 = vector.load %arg5[%c0_22, %c0_23] : memref<1x1xf32, #tpu.memory_space<vmem>>, vector<1x1xf32>
      tpu.vector_store %arg5[%c0_22, %c0_23], %60 {strides = array<i32>} : memref<1x1xf32, #tpu.memory_space<vmem>>, vector<1x1xf32>,
    } else {
    }
    %c0 = arith.constant 0 : index
    %c0_1 = arith.constant 0 : index
    %3 = vector.load %arg4[%c0, %c0_1] : memref<200x1xi32, #tpu.memory_space<vmem>>, vector<200x1xi32>
    %c0_i32_2 = arith.constant 0 : i32
    %4 = vector.broadcast %c0_i32_2 : i32 to vector<200x1xi32>
    %5 = arith.cmpi sge, %3, %4 : vector<200x1xi32>
    %6 = arith.extui %5 : vector<200x1xi1> to vector<200x1xi32>
    %7 = arith.sitofp %6 : vector<200x1xi32> to vector<200x1xf32>
    %c-1_i32 = arith.constant -1 : i32
    %8 = vector.broadcast %c-1_i32 : i32 to vector<200x1xi32>
    %9 = arith.cmpi eq, %3, %8 : vector<200x1xi32>
    %10 = arith.extui %9 : vector<200x1xi1> to vector<200x1xi32>
    %11 = arith.sitofp %10 : vector<200x1xi32> to vector<200x1xf32>
    %c-1_i32_3 = arith.constant -1 : i32
    %12 = vector.broadcast %c-1_i32_3 : i32 to vector<200x1xi32>
    %13 = arith.cmpi sge, %3, %12 : vector<200x1xi32>
    %c0_4 = arith.constant 0 : index
    %c0_5 = arith.constant 0 : index
    %14 = vector.load %arg2[%c0_4, %c0_5] : memref<200x8xf32, #tpu.memory_space<vmem>>, vector<200x8xf32>
    %cst = arith.constant 0.000000e+00 : f32
    %15 = vector.shape_cast %13 : vector<200x1xi1> to vector<200x1xi1>
    %16 = vector.broadcast %15 : vector<200x1xi1> to vector<200x8xi1>
    %17 = vector.broadcast %cst : f32 to vector<200x8xf32>
    %18 = arith.select %16, %14, %17 : vector<200x8xi1>, vector<200x8xf32>
    %c0_6 = arith.constant 0 : index
    %c0_7 = arith.constant 0 : index
    %19 = vector.load %arg3[%c0_6, %c0_7] : memref<200x8xf32, #tpu.memory_space<vmem>>, vector<200x8xf32>
    %cst_8 = arith.constant 0.000000e+00 : f32
    %20 = vector.shape_cast %13 : vector<200x1xi1> to vector<200x1xi1>
    %21 = vector.broadcast %20 : vector<200x1xi1> to vector<200x8xi1>
    %22 = vector.broadcast %cst_8 : f32 to vector<200x8xf32>
    %23 = arith.select %21, %19, %22 : vector<200x8xi1>, vector<200x8xf32>
    %24 = tpu.iota {dimensions = array<i32: 1>} : vector<200x8xi32>
    %25 = vector.broadcast %3 : vector<200x1xi32> to vector<200x8xi32>
    %26 = arith.cmpi eq, %24, %25 : vector<200x8xi32>
    %27 = arith.extui %26 : vector<200x8xi1> to vector<200x8xi32>
    %28 = arith.sitofp %27 : vector<200x8xi32> to vector<200x8xf32>
    %c0_9 = arith.constant 0 : index
    %29 = memref.load %arg1[%c0_9] : memref<2xi32, #tpu.memory_space<smem>>
    %30 = arith.sitofp %29 : i32 to f32
    %c1 = arith.constant 1 : index
    %31 = memref.load %arg1[%c1] : memref<2xi32, #tpu.memory_space<smem>>
    %c8_i32 = arith.constant 8 : i32
    %32 = arith.muli %31, %c8_i32 : i32
    %33 = arith.sitofp %32 : i32 to f32
    %34 = vector.broadcast %30 : f32 to vector<200x1xf32>
    %35 = arith.divf %7, %34 : vector<200x1xf32>
    %36 = vector.broadcast %33 : f32 to vector<200x1xf32>
    %37 = arith.divf %11, %36 : vector<200x1xf32>
    %38 = math.exp %23 : vector<200x8xf32>
    %cst_10 = arith.constant 1.000000e+01 : f32
    %39 = vector.broadcast %cst_10 : f32 to vector<200x8xf32>
    %40 = arith.mulf %39, %23 : vector<200x8xf32>
    %41 = arith.addf %18, %40 : vector<200x8xf32>
    %cst_11 = arith.constant 0.000000e+00 : f32
    %42 = vector.broadcast %cst_11 : f32 to vector<200x8xf32>
    %43 = arith.subf %42, %41 : vector<200x8xf32>
    %44 = arith.mulf %28, %43 : vector<200x8xf32>
    %45 = vector.broadcast %35 : vector<200x1xf32> to vector<200x8xf32>
    %46 = arith.mulf %44, %45 : vector<200x8xf32>
    %47 = arith.subf %23, %18 : vector<200x8xf32>
    %48 = arith.mulf %38, %47 : vector<200x8xf32>
    %49 = vector.broadcast %37 : vector<200x1xf32> to vector<200x8xf32>
    %50 = arith.mulf %48, %49 : vector<200x8xf32>
    %51 = arith.addf %46, %50 : vector<200x8xf32>
    %c0_12 = arith.constant 0 : index
    %c0_13 = arith.constant 0 : index
    %52 = vector.load %arg6[%c0_12, %c0_13] : memref<200x8xf32, #tpu.memory_space<vmem>>, vector<200x8xf32>
    %53 = arith.addf %52, %51 : vector<200x8xf32>
    %c0_14 = arith.constant 0 : index
    %c0_15 = arith.constant 0 : index
    %54 = vector.load %arg6[%c0_14, %c0_15] : memref<200x8xf32, #tpu.memory_space<vmem>>, vector<200x8xf32>
    tpu.vector_store %arg6[%c0_14, %c0_15], %53 {strides = array<i32>} : memref<200x8xf32, #tpu.memory_space<vmem>>, vector<200x8xf32>,
    %c0_i32_16 = arith.constant 0 : i32
    %55 = arith.cmpi eq, %arg0, %c0_i32_16 : i32
    %56 = arith.extui %55 : i1 to i32
    %c0_i32_17 = arith.constant 0 : i32
    %57 = arith.cmpi ne, %56, %c0_i32_17 : i32
    scf.if %57 {
      %c0_18 = arith.constant 0 : index
      %c0_19 = arith.constant 0 : index
      %58 = vector.load %arg6[%c0_18, %c0_19] : memref<200x8xf32, #tpu.memory_space<vmem>>, vector<200x8xf32>
      %59 = vector.shape_cast %58 : vector<200x8xf32> to vector<1x200x8xf32>
      %cst_20 = arith.constant dense<0.000000e+00> : vector<1xf32>
      %60 = vector.multi_reduction <add>, %59, %cst_20 [1, 2] : vector<1x200x8xf32> to vector<1xf32>
      %61 = vector.shape_cast %60 : vector<1xf32> to vector<1x1x1xf32>
      %62 = vector.extract %61[0, 0, 0] : f32 from vector<1x1x1xf32>
      %63 = vector.broadcast %62 : f32 to vector<1x1xf32>
      %c0_21 = arith.constant 0 : index
      %c0_22 = arith.constant 0 : index
      %64 = vector.load %arg5[%c0_21, %c0_22] : memref<1x1xf32, #tpu.memory_space<vmem>>, vector<1x1xf32>
      tpu.vector_store %arg5[%c0_21, %c0_22], %63 {strides = array<i32>} : memref<1x1xf32, #tpu.memory_space<vmem>>, vector<1x1xf32>,
    } else {
    }
    return
  }
  func.func @transform_0(%arg0: i32, %arg1: memref<2xi32, #tpu.memory_space<smem>>) -> (i32, i32) {
    %c0_i32 = arith.constant 0 : i32
    %c0_i32_0 = arith.constant 0 : i32
    return %arg0, %c0_i32 : i32, i32
  }
  func.func @transform_1(%arg0: i32, %arg1: memref<2xi32, #tpu.memory_space<smem>>) -> (i32, i32) {
    %c0_i32 = arith.constant 0 : i32
    %c0_i32_0 = arith.constant 0 : i32
    return %arg0, %c0_i32 : i32, i32
  }
  func.func @transform_2(%arg0: i32, %arg1: memref<2xi32, #tpu.memory_space<smem>>) -> (i32, i32) {
    %c0_i32 = arith.constant 0 : i32
    %c0_i32_0 = arith.constant 0 : i32
    return %arg0, %c0_i32 : i32, i32
  }
  func.func @transform_3(%arg0: i32, %arg1: memref<2xi32, #tpu.memory_space<smem>>) -> (i32, i32) {
    %c0_i32 = arith.constant 0 : i32
    %c0_i32_0 = arith.constant 0 : i32
    %c0_i32_1 = arith.constant 0 : i32
    return %c0_i32, %c0_i32_0 : i32, i32
  }
}

</mosaic_0001>

<bundles_post_ra>
// kernel: tpu_custom_call.1
= control target key start
LH: loop header
LB: loop body
LE: loop exit
PB: predicated region body
PF: predicated region fallthrough
CT: control target
= control target key end

     0   :  { %s2713_s0 = inlined_call_operand.vmem [shape: s32[2], index: 0, kind: input, shape index: {}]   ;;  %s2714_s1 = inlined_call_operand.vmem [shape: f32[200,8], index: 1, kind: input, shape index: {}]   ;;  %s2715_s2 = inlined_call_operand.vmem [shape: f32[200,8], index: 2, kind: input, shape index: {}]   ;;  %s2716_s3 = inlined_call_operand.vmem [shape: s32[200,1], index: 3, kind: input, shape index: {}]   ;;  %s2717_s4 = inlined_call_operand.hbm [shape: f32[1,1], index: 4, kind: output, shape index: {}]  }
   0x1   :  { %s9_s17 = sshll.u32 %s2713_s0, 4  ;;  %s10_s17 = int_to_ptr.vmem [resolvable:$true] %s9_s17 }
   0x2   :  { %s1533_s18 = scalar_lea.vmem %s10_s17, 16  ;;  %p1538_p1 = scmp.lt.s32.totalorder %s10_s17, %s10_s17 }
   0x3   :  { %p1534_p0 = scmp.ne.s32.totalorder %s10_s17, %s1533_s18  ;;  %p1539_p2 = scmp.lt.s32.totalorder %s1533_s18, %s1533_s18 }
   0x5   :  { %p1540_p3 = por %p1539_p2, %p1538_p1 }
   0x7   :  { %p1541_p4 = pnand %p1540_p3, %p1534_p0 }
   0x9   :  { %1544 = shalt.err (!%p1541_p4)  }
   0xa   :  { %s1571_s19 = smov [#allocation4]  }
   0xb   :  { %12 = dma.vmem_to_smem %s10_s17, 16, %s1571_s19, [#allocation3] }
   0xc   :  { %1567 = dma.done.wait [#allocation3], 16 }
   0xd   :  { %1568 = vsyncadd [#allocation3], 4294967280 }
   0xe   :  { %14 = sfence }
   0xf   :  { %v1606_v0 = vld [vmem:[%s2716_s3 + $0x10] sm:$0xff]  ;;  %v1611_v1 = vld [vmem:[%s2716_s3] sm:$0xff]  ;;  %v1616_v2 = vld [vmem:[%s2716_s3 + $0x18] sm:$0xff]  ;;  %v1572_v3 = vmov 0  }
  0x10   :  { %1478 = vset.pattern.permute.xlu1 %v1572_v3  ;;  %1477 = vset.pattern.permute.xlu0 %v1572_v3  ;;  %vm231_vm0 = vcmp.ge.s32.totalorder %v1606_v0, 4294967295  ;;  %vm229_vm1 = vcmp.ge.s32.totalorder %v1611_v1, 4294967295  ;;  %vm232_vm2 = vcmp.ge.s32.totalorder %v1616_v2, 4294967295  ;;  %v1626_v4 = vld [vmem:[%s2716_s3 + $0x8] sm:$0xff]  ;;  %v1639_v8 = vld [vmem:[%s2716_s3 + $0x20] sm:$0xff]  ;;  %v1648_v11 = vld [vmem:[%s2716_s3 + $0x38] sm:$0xff] }
  0x11   :  { %v281_v5 = vsel %vm231_vm0, 1, %v1572_v3  ;;  %v279_v6 = vsel %vm229_vm1, 1, %v1572_v3  ;;  %vm230_vm3 = vcmp.ge.s32.totalorder %v1626_v4, 4294967295  ;;  %v1634_v7 = vld [vmem:[%s2716_s3 + $0x28] sm:$0xff]  ;;  %v282_v9 = vsel %vm232_vm2, 1, %v1572_v3  ;;  %v1653_v12 = vld [vmem:[%s2716_s3 + $0x30] sm:$0xff] }
  0x12   :  { %311 = vperm.xlu1 %1478, %v281_v5   ;;  %305 = vperm.xlu0 %1477, %v279_v6   ;;  %v280_v10 = vsel %vm230_vm3, 1, %v1572_v3  ;;  %vm234_vm4 = vcmp.ge.s32.totalorder %v1634_v7, 4294967295  ;;  %vm233_vm5 = vcmp.ge.s32.totalorder %v1639_v8, 4294967295  ;;  %vm236_vm6 = vcmp.ge.s32.totalorder %v1648_v11, 4294967295  ;;  %v1662_v15 = vld [vmem:[%s2716_s3 + $0x48] sm:$0xff]  ;;  %v1667_v16 = vld [vmem:[%s2716_s3 + $0x40] sm:$0xff] }
  0x13   :  { %v284_v13 = vsel %vm234_vm4, 1, %v1572_v3  ;;  %v283_v14 = vsel %vm233_vm5, 1, %v1572_v3  ;;  %vm235_vm7 = vcmp.ge.s32.totalorder %v1653_v12, 4294967295  ;;  %v286_v17 = vsel %vm236_vm6, 1, %v1572_v3  ;;  %v1676_v19 = vld [vmem:[%s2716_s3 + $0x58] sm:$0xff]  ;;  %v1681_v20 = vld [vmem:[%s2716_s3 + $0x50] sm:$0xff] }
  0x14   :  { %v285_v18 = vsel %vm235_vm7, 1, %v1572_v3  ;;  %vm238_vm8 = vcmp.ge.s32.totalorder %v1662_v15, 4294967295  ;;  %vm237_vm9 = vcmp.ge.s32.totalorder %v1667_v16, 4294967295  ;;  %vm240_vm10 = vcmp.ge.s32.totalorder %v1676_v19, 4294967295  ;;  %v1690_v23 = vld [vmem:[%s2716_s3 + $0x68] sm:$0xff]  ;;  %v1695_v24 = vld [vmem:[%s2716_s3 + $0x60] sm:$0xff] }
  0x15   :  { %v288_v21 = vsel %vm238_vm8, 1, %v1572_v3  ;;  %v287_v22 = vsel %vm237_vm9, 1, %v1572_v3  ;;  %vm239_vm11 = vcmp.ge.s32.totalorder %v1681_v20, 4294967295  ;;  %v290_v25 = vsel %vm240_vm10, 1, %v1572_v3 }
  0x16   :  { %314 = vperm.xlu1 %1478, %v282_v9   ;;  %308 = vperm.xlu0 %1477, %v280_v10   ;;  %v289_v26 = vsel %vm239_vm11, 1, %v1572_v3  ;;  %vm242_vm12 = vcmp.ge.s32.totalorder %v1690_v23, 4294967295  ;;  %vm241_vm13 = vcmp.ge.s32.totalorder %v1695_v24, 4294967295 }
  0x1a   :  { %320 = vperm.xlu1 %1478, %v284_v13   ;;  %317 = vperm.xlu0 %1477, %v283_v14  }
  0x1e   :  { %326 = vperm.xlu1 %1478, %v286_v17   ;;  %323 = vperm.xlu0 %1477, %v285_v18  }
  0x22   :  { %332 = vperm.xlu1 %1478, %v288_v21   ;;  %329 = vperm.xlu0 %1477, %v287_v22  }
  0x23   :  { %15 = vsyncpa [#allocation6], 0  ;;  %v1704_v27 = vld [vmem:[%s2716_s3 + $0x78] sm:$0xff]  ;;  %v1709_v28 = vld [vmem:[%s2716_s3 + $0x70] sm:$0xff]  ;;  %v292_v29 = vsel %vm242_vm12, 1, %v1572_v3  ;;  %v291_v30 = vsel %vm241_vm13, 1, %v1572_v3 }
  0x24   :  { %vm244_vm14 = vcmp.ge.s32.totalorder %v1704_v27, 4294967295  ;;  %vm243_vm15 = vcmp.ge.s32.totalorder %v1709_v28, 4294967295  ;;  %v1718_v31 = vld [vmem:[%s2716_s3 + $0x88] sm:$0xff]  ;;  %v1723_v32 = vld [vmem:[%s2716_s3 + $0x80] sm:$0xff]  ;;  %v1732_v35 = vld [vmem:[%s2716_s3 + $0x98] sm:$0xff]  ;;  %s631_s16 = sld [smem:[#allocation4]] }
  0x25   :  { %v294_v33 = vsel %vm244_vm14, 1, %v1572_v3  ;;  %v293_v34 = vsel %vm243_vm15, 1, %v1572_v3  ;;  %vm246_vm0 = vcmp.ge.s32.totalorder %v1718_v31, 4294967295  ;;  %vm245_vm1 = vcmp.ge.s32.totalorder %v1723_v32, 4294967295  ;;  %v1737_v36 = vld [vmem:[%s2716_s3 + $0x90] sm:$0xff]  ;;  %v1746_v39 = vld [vmem:[%s2716_s3 + $0xa8] sm:$0xff] }
  0x26   :  { %338 = vperm.xlu1 %1478, %v290_v25   ;;  %335 = vperm.xlu0 %1477, %v289_v26   ;;  %v296_v37 = vsel %vm246_vm0, 1, %v1572_v3  ;;  %v295_v38 = vsel %vm245_vm1, 1, %v1572_v3  ;;  %vm248_vm2 = vcmp.ge.s32.totalorder %v1732_v35, 4294967295  ;;  %vm247_vm3 = vcmp.ge.s32.totalorder %v1737_v36, 4294967295  ;;  %v1751_v40 = vld [vmem:[%s2716_s3 + $0xa0] sm:$0xff]  ;;  %v1760_v43 = vld [vmem:[%s2716_s3 + $0xb8] sm:$0xff] }
  0x27   :  { %v298_v41 = vsel %vm248_vm2, 1, %v1572_v3  ;;  %v297_v42 = vsel %vm247_vm3, 1, %v1572_v3  ;;  %vm250_vm4 = vcmp.ge.s32.totalorder %v1746_v39, 4294967295  ;;  %vm249_vm5 = vcmp.ge.s32.totalorder %v1751_v40, 4294967295  ;;  %v1765_v44 = vld [vmem:[%s2716_s3 + $0xb0] sm:$0xff]  ;;  %v1774_v47 = vld [vmem:[%s2716_s3 + $0xc0] sm:$0xff] }
  0x28   :  { %v300_v45 = vsel %vm250_vm4, 1, %v1572_v3  ;;  %v299_v46 = vsel %vm249_vm5, 1, %v1572_v3  ;;  %vm252_vm6 = vcmp.ge.s32.totalorder %v1760_v43, 4294967295  ;;  %vm251_vm7 = vcmp.ge.s32.totalorder %v1765_v44, 4294967295  ;;  %s1469_s17 = sld [smem:[#allocation4 + $0x1]] }
  0x29   :  { %v302_v48 = vsel %vm252_vm6, 1, %v1572_v3  ;;  %v301_v49 = vsel %vm251_vm7, 1, %v1572_v3  ;;  %vm253_vm8 = vcmp.ge.s32.totalorder %v1774_v47, 4294967295  ;;  %vm80_vm9 = vcmp.ge.s32.totalorder %v1626_v4, 0 }
  0x2a   :  { %344 = vperm.xlu1 %1478, %v292_v29   ;;  %341 = vperm.xlu0 %1477, %v291_v30   ;;  %v303_v50 = vsel %vm253_vm8, 1, %v1572_v3  ;;  %s632_s3 = scvt.s32.f32 %s631_s16  ;;  %vm79_vm10 = vcmp.ge.s32.totalorder %v1611_v1, 0  ;;  %v1573_v54 = vmov 0.0   ;;  %vm155_vm11 = vcmp.eq.s32.totalorder %v1626_v4, 4294967295 }
  0x2b   :  { %v1395_v55 = vsel %vm80_vm9, 1.0, %v1573_v54  ;;  %v1394_v56 = vsel %vm79_vm10, 1.0, %v1573_v54  ;;  %vm154_vm12 = vcmp.eq.s32.totalorder %v1611_v1, 4294967295  ;;  %v1420_v60 = vsel %vm155_vm11, 1.0, %v1573_v54 }
  0x2c   :  { %v636_v51 = vstv %s632_s3  ;;  %v1419_v61 = vsel %vm154_vm12, 1.0, %v1573_v54  ;;  %vm156_vm13 = vcmp.eq.s32.totalorder %v1606_v0, 4294967295  ;;  %vm81_vm14 = vcmp.ge.s32.totalorder %v1606_v0, 0 }
  0x2d   :  { %1479 = vrcp.f32 %v636_v51  ;;  %v1396_v3 = vsel %vm81_vm14, 1.0, %v1573_v54  ;;  %vm157_vm15 = vcmp.eq.s32.totalorder %v1616_v2, 4294967295  ;;  %vm82_vm0 = vcmp.ge.s32.totalorder %v1616_v2, 0 }
  0x2e   :  { %350 = vperm.xlu1 %1478, %v294_v33   ;;  %347 = vperm.xlu0 %1477, %v293_v34   ;;  %s1470_s18 = sshll.u32 %s1469_s17, 3  ;;  %vm26_vm1 = vcmask 64512   ;;  %v1422_v5 = vsel %vm157_vm15, 1.0, %v1573_v54  ;;  %v1397_v6 = vsel %vm82_vm0, 1.0, %v1573_v54  ;;  %vm158_vm2 = vcmp.eq.s32.totalorder %v1639_v8, 4294967295 }
  0x2f   :  { %s635_s19 = scvt.s32.f32 %s1470_s18  ;;  %28 = vst.msk [vmem:[#allocation2 + $0x8] sm:$0xff] %vm26_vm1, %v1573_v54  ;;  %27 = vst.msk [vmem:[#allocation2] sm:$0xff] %vm26_vm1, %v1573_v54  ;;  %vm83_vm3 = vcmp.ge.s32.totalorder %v1639_v8, 0  ;;  %v1423_v13 = vsel %vm158_vm2, 1.0, %v1573_v54  ;;  %vm159_vm4 = vcmp.eq.s32.totalorder %v1634_v7, 4294967295  ;;  %vm84_vm5 = vcmp.ge.s32.totalorder %v1634_v7, 0 }
  0x30   :  { %29 = vst.msk [vmem:[#allocation2 + $0x10] sm:$0xff] %vm26_vm1, %v1573_v54  ;;  %30 = vst.msk [vmem:[#allocation2 + $0x18] sm:$0xff] %vm26_vm1, %v1573_v54  ;;  %v1398_v14 = vsel %vm83_vm3, 1.0, %v1573_v54  ;;  %v1424_v17 = vsel %vm159_vm4, 1.0, %v1573_v54  ;;  %v1399_v18 = vsel %vm84_vm5, 1.0, %v1573_v54  ;;  %vm160_vm6 = vcmp.eq.s32.totalorder %v1653_v12, 4294967295 }
  0x31   :  { %v663_v52 = vstv %s635_s19  ;;  %31 = vst.msk [vmem:[#allocation2 + $0x20] sm:$0xff] %vm26_vm1, %v1573_v54  ;;  %32 = vst.msk [vmem:[#allocation2 + $0x28] sm:$0xff] %vm26_vm1, %v1573_v54  ;;  %vm85_vm7 = vcmp.ge.s32.totalorder %v1653_v12, 0  ;;  %v1425_v22 = vsel %vm160_vm6, 1.0, %v1573_v54  ;;  %vm161_vm8 = vcmp.eq.s32.totalorder %v1648_v11, 4294967295 }
  0x32   :  { %356 = vperm.xlu1 %1478, %v296_v37   ;;  %353 = vperm.xlu0 %1477, %v295_v38   ;;  %1481 = vrcp.f32 %v663_v52  ;;  %33 = vst.msk [vmem:[#allocation2 + $0x30] sm:$0xff] %vm26_vm1, %v1573_v54  ;;  %34 = vst.msk [vmem:[#allocation2 + $0x38] sm:$0xff] %vm26_vm1, %v1573_v54  ;;  %v1400_v25 = vsel %vm85_vm7, 1.0, %v1573_v54  ;;  %vm86_vm9 = vcmp.ge.s32.totalorder %v1648_v11, 0  ;;  %v1426_v29 = vsel %vm161_vm8, 1.0, %v1573_v54 }
  0x33   :  { %35 = vst.msk [vmem:[#allocation2 + $0x40] sm:$0xff] %vm26_vm1, %v1573_v54  ;;  %36 = vst.msk [vmem:[#allocation2 + $0x48] sm:$0xff] %vm26_vm1, %v1573_v54  ;;  %v1401_v30 = vsel %vm86_vm9, 1.0, %v1573_v54  ;;  %vm162_vm10 = vcmp.eq.s32.totalorder %v1667_v16, 4294967295  ;;  %vm87_vm11 = vcmp.ge.s32.totalorder %v1667_v16, 0  ;;  %vm163_vm12 = vcmp.eq.s32.totalorder %v1662_v15, 4294967295 }
  0x34   :  { %37 = vst.msk [vmem:[#allocation2 + $0x50] sm:$0xff] %vm26_vm1, %v1573_v54  ;;  %38 = vst.msk [vmem:[#allocation2 + $0x58] sm:$0xff] %vm26_vm1, %v1573_v54  ;;  %v1427_v34 = vsel %vm162_vm10, 1.0, %v1573_v54  ;;  %v1402_v37 = vsel %vm87_vm11, 1.0, %v1573_v54  ;;  %vm164_vm14 = vcmp.eq.s32.totalorder %v1681_v20, 4294967295  ;;  %vm89_vm15 = vcmp.ge.s32.totalorder %v1681_v20, 0 }
  0x35   :  { %39 = vst.msk [vmem:[#allocation2 + $0x60] sm:$0xff] %vm26_vm1, %v1573_v54  ;;  %40 = vst.msk [vmem:[#allocation2 + $0x68] sm:$0xff] %vm26_vm1, %v1573_v54  ;;  %vm90_vm0 = vcmp.ge.s32.totalorder %v1676_v19, 0  ;;  %vm165_vm2 = vcmp.eq.s32.totalorder %v1676_v19, 4294967295  ;;  %vm166_vm3 = vcmp.eq.s32.totalorder %v1695_v24, 4294967295  ;;  %vm91_vm4 = vcmp.ge.s32.totalorder %v1695_v24, 0 }
  0x36   :  { %362 = vperm.xlu1 %1478, %v298_v41   ;;  %359 = vperm.xlu0 %1477, %v297_v42   ;;  %41 = vst.msk [vmem:[#allocation2 + $0x70] sm:$0xff] %vm26_vm1, %v1573_v54  ;;  %42 = vst.msk [vmem:[#allocation2 + $0x78] sm:$0xff] %vm26_vm1, %v1573_v54  ;;  %v1428_v41 = vsel %vm163_vm12, 1.0, %v1573_v54  ;;  %v1430_v52 = vsel %vm165_vm2, 1.0, %v1573_v54  ;;  %vm92_vm5 = vcmp.ge.s32.totalorder %v1690_v23, 0  ;;  %vm167_vm6 = vcmp.eq.s32.totalorder %v1690_v23, 4294967295 }
  0x37   :  { %v1793_v53 = vpop.eup %1479  ;;  %43 = vst.msk [vmem:[#allocation2 + $0x80] sm:$0xff] %vm26_vm1, %v1573_v54  ;;  %44 = vst.msk [vmem:[#allocation2 + $0x88] sm:$0xff] %vm26_vm1, %v1573_v54  ;;  %vm168_vm7 = vcmp.eq.s32.totalorder %v1709_v28, 4294967295  ;;  %vm93_vm8 = vcmp.ge.s32.totalorder %v1709_v28, 0  ;;  %vm94_vm9 = vcmp.ge.s32.totalorder %v1704_v27, 0  ;;  %vm169_vm10 = vcmp.eq.s32.totalorder %v1704_v27, 4294967295 }
  0x38   :  { %v639_v57 = vmul.f32 %v1793_v53, %v1395_v55  ;;  %v638_v58 = vmul.f32 %v1793_v53, %v1394_v56  ;;  %45 = vst.msk [vmem:[#allocation2 + $0x90] sm:$0xff] %vm26_vm1, %v1573_v54  ;;  %46 = vst.msk [vmem:[#allocation2 + $0x98] sm:$0xff] %vm26_vm1, %v1573_v54  ;;  %v641_v10 = vmul.f32 %v1793_v53, %v1397_v6  ;;  %v1431_v56 = vsel %vm166_vm3, 1.0, %v1573_v54 }
  0x39   :  { %47 = vst.msk [vmem:[#allocation2 + $0xa0] sm:$0xff] %vm26_vm1, %v1573_v54  ;;  %48 = vst.msk [vmem:[#allocation2 + $0xa8] sm:$0xff] %vm26_vm1, %v1573_v54  ;;  %vm170_vm11 = vcmp.eq.s32.totalorder %v1723_v32, 4294967295  ;;  %vm95_vm12 = vcmp.ge.s32.totalorder %v1723_v32, 0  ;;  %vm98_vm2 = vcmp.ge.s32.totalorder %v1732_v35, 0  ;;  %vm173_vm3 = vcmp.eq.s32.totalorder %v1732_v35, 4294967295 }
  0x3a   :  { %368 = vperm.xlu1 %1478, %v300_v45   ;;  %365 = vperm.xlu0 %1477, %v299_v46   ;;  %49 = vst.msk [vmem:[#allocation2 + $0xb0] sm:$0xff] %vm26_vm1, %v1573_v54  ;;  %50 = vst.msk [vmem:[#allocation2 + $0xb8] sm:$0xff] %vm26_vm1, %v1573_v54  ;;  %v1429_v46 = vsel %vm164_vm14, 1.0, %v1573_v54  ;;  %vm171_vm14 = vcmp.eq.s32.totalorder %v1718_v31, 4294967295 }
  0x3b   :  { %51 = vst.msk [vmem:[#allocation2 + $0xc0] sm:$0xff] %vm26_vm1, %v1573_v54 }
  0x3c   :  { %v1803_v59 = vpop.eup %1481 }
  0x3d   :  { %v666_v62 = vmul.f32 %v1803_v59, %v1420_v60  ;;  %v665_v63 = vmul.f32 %v1803_v59, %v1419_v61  ;;  %v668_v9 = vmul.f32 %v1803_v59, %v1422_v5  ;;  %v670_v21 = vmul.f32 %v1803_v59, %v1424_v17 }
  0x3e   :  { %374 = vperm.xlu1 %1478, %v302_v48   ;;  %371 = vperm.xlu0 %1477, %v301_v49   ;;  %v671_v26 = vmul.f32 %v1803_v59, %v1425_v22  ;;  %v672_v33 = vmul.f32 %v1803_v59, %v1426_v29  ;;  %v673_v38 = vmul.f32 %v1803_v59, %v1427_v34  ;;  %v1404_v48 = vsel %vm89_vm15, 1.0, %v1573_v54 }
  0x3f   :  { %v674_v45 = vmul.f32 %v1803_v59, %v1428_v41  ;;  %v675_v49 = vmul.f32 %v1803_v59, %v1429_v46  ;;  %v676_v55 = vmul.f32 %v1803_v59, %v1430_v52  ;;  %vm172_vm15 = vcmp.eq.s32.totalorder %v1737_v36, 4294967295 }
  0x42   :  { %482 = vperm.xlu1 %1478, %v1611_v1   ;;  %377 = vperm.xlu0 %1477, %v303_v50   ;;  %v1421_v1 = vsel %vm156_vm13, 1.0, %v1573_v54  ;;  %vm88_vm13 = vcmp.ge.s32.totalorder %v1662_v15, 0  ;;  %v648_v50 = vmul.f32 %v1793_v53, %v1404_v48 }
  0x43   :  { %v1403_v42 = vsel %vm88_vm13, 1.0, %v1573_v54  ;;  %vm96_vm13 = vcmp.ge.s32.totalorder %v1718_v31, 0 }
  0x46   :  { %488 = vperm.xlu1 %1478, %v1606_v0   ;;  %485 = vperm.xlu0 %1477, %v1626_v4   ;;  %v667_v4 = vmul.f32 %v1803_v59, %v1421_v1  ;;  %v640_v0 = vmul.f32 %v1793_v53, %v1396_v3 }
  0x4a   :  { %494 = vperm.xlu1 %1478, %v1639_v8   ;;  %491 = vperm.xlu0 %1477, %v1616_v2   ;;  %v669_v2 = vmul.f32 %v1803_v59, %v1423_v13  ;;  %v642_v8 = vmul.f32 %v1793_v53, %v1398_v14 }
  0x4e   :  { %500 = vperm.xlu1 %1478, %v1653_v12   ;;  %497 = vperm.xlu0 %1477, %v1634_v7   ;;  %v643_v7 = vmul.f32 %v1793_v53, %v1399_v18  ;;  %v644_v12 = vmul.f32 %v1793_v53, %v1400_v25 }
  0x52   :  { %506 = vperm.xlu1 %1478, %v1667_v16   ;;  %503 = vperm.xlu0 %1477, %v1648_v11   ;;  %v645_v11 = vmul.f32 %v1793_v53, %v1401_v30  ;;  %v646_v16 = vmul.f32 %v1793_v53, %v1402_v37 }
  0x56   :  { %512 = vperm.xlu1 %1478, %v1681_v20   ;;  %509 = vperm.xlu0 %1477, %v1662_v15   ;;  %v647_v15 = vmul.f32 %v1793_v53, %v1403_v42  ;;  %v1405_v20 = vsel %vm90_vm0, 1.0, %v1573_v54  ;;  %vm97_vm0 = vcmp.ge.s32.totalorder %v1737_v36, 0 }
  0x57   :  { %v649_v51 = vmul.f32 %v1793_v53, %v1405_v20 }
  0x5a   :  { %518 = vperm.xlu1 %1478, %v1695_v24   ;;  %515 = vperm.xlu0 %1477, %v1676_v19   ;;  %v677_v19 = vmul.f32 %v1803_v59, %v1431_v56  ;;  %v1407_v24 = vsel %vm92_vm5, 1.0, %v1573_v54  ;;  %vm99_vm5 = vcmp.ge.s32.totalorder %v1751_v40, 0 }
  0x5e   :  { %847 = vperm.xlu1 %1478, %v639_v57   ;;  %842 = vperm.xlu0 %1477, %v638_v58   ;;  %v1406_v57 = vsel %vm91_vm4, 1.0, %v1573_v54  ;;  %vm174_vm4 = vcmp.eq.s32.totalorder %v1751_v40, 4294967295 }
  0x5f   :  { %v650_v58 = vmul.f32 %v1793_v53, %v1406_v57  ;;  %v1439_v52 = vsel %vm174_vm4, 1.0, %v1573_v54 }
  0x62   :  { %1047 = vperm.xlu1 %1478, %v666_v62   ;;  %1042 = vperm.xlu0 %1477, %v665_v63   ;;  %v651_v62 = vmul.f32 %v1793_v53, %v1407_v24  ;;  %v1432_v63 = vsel %vm167_vm6, 1.0, %v1573_v54  ;;  %vm100_vm6 = vcmp.ge.s32.totalorder %v1746_v39, 0 }
  0x66   :  { %1052 = vperm.xlu1 %1478, %v667_v4   ;;  %852 = vperm.xlu0 %1477, %v640_v0   ;;  %v1433_v4 = vsel %vm168_vm7, 1.0, %v1573_v54  ;;  %v1408_v0 = vsel %vm93_vm8, 1.0, %v1573_v54  ;;  %vm175_vm7 = vcmp.eq.s32.totalorder %v1746_v39, 4294967295  ;;  %vm176_vm8 = vcmp.eq.s32.totalorder %v1765_v44, 4294967295 }
  0x6a   :  { %1057 = vperm.xlu1 %1478, %v668_v9   ;;  %857 = vperm.xlu0 %1477, %v641_v10   ;;  %v652_v9 = vmul.f32 %v1793_v53, %v1408_v0  ;;  %v1409_v10 = vsel %vm94_vm9, 1.0, %v1573_v54  ;;  %vm101_vm9 = vcmp.ge.s32.totalorder %v1765_v44, 0 }
  0x6e   :  { %1062 = vperm.xlu1 %1478, %v669_v2   ;;  %862 = vperm.xlu0 %1477, %v642_v8   ;;  %v653_v2 = vmul.f32 %v1793_v53, %v1409_v10  ;;  %v1434_v8 = vsel %vm169_vm10, 1.0, %v1573_v54  ;;  %v429_v10 = vld [vmem:[%s2715_s2] sm:$0xff] }
  0x72   :  { %1067 = vperm.xlu1 %1478, %v670_v21   ;;  %867 = vperm.xlu0 %1477, %v643_v7   ;;  %v1435_v21 = vsel %vm170_vm11, 1.0, %v1573_v54  ;;  %v1410_v7 = vsel %vm95_vm12, 1.0, %v1573_v54  ;;  %vm177_vm11 = vcmp.eq.s32.totalorder %v1760_v43, 4294967295  ;;  %vm102_vm12 = vcmp.ge.s32.totalorder %v1760_v43, 0 }
  0x76   :  { %1072 = vperm.xlu1 %1478, %v671_v26   ;;  %872 = vperm.xlu0 %1477, %v644_v12   ;;  %v654_v26 = vmul.f32 %v1793_v53, %v1410_v7  ;;  %v1411_v12 = vsel %vm96_vm13, 1.0, %v1573_v54  ;;  %v1442_v7 = vsel %vm177_vm11, 1.0, %v1573_v54 }
  0x7a   :  { %1077 = vperm.xlu1 %1478, %v672_v33   ;;  %877 = vperm.xlu0 %1477, %v645_v11   ;;  %v655_v33 = vmul.f32 %v1793_v53, %v1411_v12  ;;  %v1436_v11 = vsel %vm171_vm14, 1.0, %v1573_v54  ;;  %vm178_vm14 = vcmp.eq.s32.totalorder %v1774_v47, 4294967295  ;;  %v431_v12 = vld [vmem:[%s2715_s2 + $0x10] sm:$0xff] }
  0x7e   :  { %1082 = vperm.xlu1 %1478, %v673_v38   ;;  %882 = vperm.xlu0 %1477, %v646_v16   ;;  %v1437_v38 = vsel %vm172_vm15, 1.0, %v1573_v54  ;;  %v1412_v16 = vsel %vm97_vm0, 1.0, %v1573_v54  ;;  %vm103_vm15 = vcmp.ge.s32.totalorder %v1774_v47, 0 }
  0x82   :  { %1087 = vperm.xlu1 %1478, %v674_v45   ;;  %887 = vperm.xlu0 %1477, %v647_v15   ;;  %v656_v45 = vmul.f32 %v1793_v53, %v1412_v16  ;;  %v1413_v15 = vsel %vm98_vm2, 1.0, %v1573_v54 }
  0x86   :  { %1092 = vperm.xlu1 %1478, %v675_v49   ;;  %892 = vperm.xlu0 %1477, %v648_v50   ;;  %v657_v49 = vmul.f32 %v1793_v53, %v1413_v15  ;;  %v1438_v50 = vsel %vm173_vm3, 1.0, %v1573_v54  ;;  %v1418_v15 = vsel %vm103_vm15, 1.0, %v1573_v54 }
  0x8a   :  { %897 = vperm.xlu1 %1478, %v649_v51   ;;  %521 = vperm.xlu0 %1477, %v1690_v23   ;;  %v678_v23 = vmul.f32 %v1803_v59, %v1432_v63 }
  0x8e   :  { %524 = vperm.xlu1 %1478, %v1709_v28   ;;  %1097 = vperm.xlu0 %1477, %v676_v55   ;;  %v679_v28 = vmul.f32 %v1803_v59, %v1433_v4  ;;  %v1414_v55 = vsel %vm99_vm5, 1.0, %v1573_v54 }
  0x91   :  { %v1934_v60 = vpop.permute.xlu1 %311  ;;  %v1936_v61 = vpop.permute.xlu0 %305 }
  0x92   :  { %1102 = vperm.xlu1 %1478, %v677_v19   ;;  %902 = vperm.xlu0 %1477, %v650_v58   ;;  %v658_v19 = vmul.f32 %v1793_v53, %v1414_v55  ;;  %v1415_v58 = vsel %vm100_vm6, 1.0, %v1573_v54  ;;  %vm379_vm10 = vcmp.eq.s32.totalorder %v1936_v61, 1  ;;  %vm381_vm0 = vcmp.eq.s32.totalorder %v1934_v60, 1 }
  0x93   :  { %v659_v63 = vmul.f32 %v1793_v53, %v1415_v58  ;;  %v256_v58 = vld [vmem:[%s2714_s1 + $0x10] sm:$0xff] }
  0x95   :  { %v1942_v1 = vpop.permute.xlu1 %314  ;;  %v1944_v3 = vpop.permute.xlu0 %308 }
  0x96   :  { %907 = vperm.xlu1 %1478, %v651_v62   ;;  %527 = vperm.xlu0 %1477, %v1704_v27   ;;  %v680_v27 = vmul.f32 %v1803_v59, %v1434_v8  ;;  %vm380_vm13 = vcmp.eq.s32.totalorder %v1944_v3, 1  ;;  %vm382_vm2 = vcmp.eq.s32.totalorder %v1942_v1, 1 }
  0x99   :  { %v1951_v5 = vpop.permute.xlu1 %320  ;;  %v1953_v6 = vpop.permute.xlu0 %317 }
  0x9a   :  { %530 = vperm.xlu1 %1478, %v1723_v32   ;;  %1107 = vperm.xlu0 %1477, %v678_v23   ;;  %v681_v32 = vmul.f32 %v1803_v59, %v1435_v21  ;;  %v1440_v23 = vsel %vm175_vm7, 1.0, %v1573_v54  ;;  %vm383_vm3 = vcmp.eq.s32.totalorder %v1953_v6, 1  ;;  %vm384_vm4 = vcmp.eq.s32.totalorder %v1951_v5, 1 }
  0x9d   :  { %v1960_v13 = vpop.permute.xlu1 %326  ;;  %v1962_v14 = vpop.permute.xlu0 %323 }
  0x9e   :  { %1112 = vperm.xlu1 %1478, %v679_v28   ;;  %912 = vperm.xlu0 %1477, %v652_v9   ;;  %v1441_v28 = vsel %vm176_vm8, 1.0, %v1573_v54  ;;  %v1416_v9 = vsel %vm101_vm9, 1.0, %v1573_v54  ;;  %vm385_vm7 = vcmp.eq.s32.totalorder %v1962_v14, 1  ;;  %vm386_vm9 = vcmp.eq.s32.totalorder %v1960_v13, 1  ;;  %v439_v14 = vld [vmem:[%s2715_s2 + $0x50] sm:$0xff] }
  0x9f   :  { %v660_v21 = vmul.f32 %v1793_v53, %v1416_v9  ;;  %v433_v9 = vld [vmem:[%s2715_s2 + $0x20] sm:$0xff] }
  0xa1   :  { %v1968_v17 = vpop.permute.xlu1 %332  ;;  %v1970_v18 = vpop.permute.xlu0 %329 }
  0xa2   :  { %917 = vperm.xlu1 %1478, %v653_v2   ;;  %533 = vperm.xlu0 %1477, %v1718_v31   ;;  %v682_v31 = vmul.f32 %v1803_v59, %v1436_v11  ;;  %vm387_vm11 = vcmp.eq.s32.totalorder %v1970_v18, 1 }
  0xa5   :  { %v1977_v22 = vpop.permute.xlu1 %338  ;;  %v1979_v25 = vpop.permute.xlu0 %335 }
  0xa6   :  { %536 = vperm.xlu1 %1478, %v1737_v36   ;;  %1117 = vperm.xlu0 %1477, %v680_v27   ;;  %v683_v36 = vmul.f32 %v1803_v59, %v1437_v38  ;;  %v687_v27 = vmul.f32 %v1803_v59, %v1441_v28  ;;  %v688_v38 = vmul.f32 %v1803_v59, %v1442_v7  ;;  %vm389_vm15 = vcmp.eq.s32.totalorder %v1979_v25, 1 }
  0xa9   :  { %v1986_v29 = vpop.permute.xlu1 %344  ;;  %v1988_v30 = vpop.permute.xlu0 %341 }
  0xaa   :  { %1122 = vperm.xlu1 %1478, %v681_v32   ;;  %922 = vperm.xlu0 %1477, %v654_v26   ;;  %v1417_v32 = vsel %vm102_vm12, 1.0, %v1573_v54 }
  0xab   :  { %v661_v16 = vmul.f32 %v1793_v53, %v1417_v32 }
  0xad   :  { %v1994_v34 = vpop.permute.xlu1 %350  ;;  %v1996_v37 = vpop.permute.xlu0 %347 }
  0xae   :  { %927 = vperm.xlu1 %1478, %v655_v33   ;;  %539 = vperm.xlu0 %1477, %v1732_v35   ;;  %v684_v35 = vmul.f32 %v1803_v59, %v1438_v50  ;;  %v479_v50 = vlaneseq }
  0xb0   :  { %v2144_v32 = vand.u32 127, %v479_v50 }
  0xb1   :  { %v2003_v41 = vpop.permute.xlu1 %356  ;;  %v2005_v42 = vpop.permute.xlu0 %353 }
  0xb2   :  { %542 = vperm.xlu1 %1478, %v1751_v40   ;;  %1127 = vperm.xlu0 %1477, %v682_v31   ;;  %v685_v40 = vmul.f32 %v1803_v59, %v1439_v52 }
  0xb5   :  { %v2012_v46 = vpop.permute.xlu1 %362  ;;  %v2014_v48 = vpop.permute.xlu0 %359 }
  0xb6   :  { %1132 = vperm.xlu1 %1478, %v683_v36   ;;  %932 = vperm.xlu0 %1477, %v656_v45   ;;  %v1443_v45 = vsel %vm178_vm14, 1.0, %v1573_v54 }
  0xb9   :  { %v2020_v20 = vpop.permute.xlu1 %368  ;;  %v2022_v51 = vpop.permute.xlu0 %365 }
  0xba   :  { %937 = vperm.xlu1 %1478, %v657_v49   ;;  %545 = vperm.xlu0 %1477, %v1746_v39   ;;  %v686_v39 = vmul.f32 %v1803_v59, %v1440_v23  ;;  %v2103_v49 = vsel %vm381_vm0, %v431_v12, 0.0 }
  0xbb   :  { %v742_v23 = vmul.f32 10.0, %v2103_v49 }
  0xbd   :  { %v2029_v56 = vpop.permute.xlu1 %374  ;;  %v2031_v57 = vpop.permute.xlu0 %371 }
  0xbe   :  { %2721 = vst [vmem:[#allocation9_spill] sm:$0xff] %v2029_v56  ;;  %2722 = vst [vmem:[#allocation10_spill] sm:$0xff] %v2031_v57  ;;  %548 = vperm.xlu1 %1478, %v1765_v44   ;;  %1137 = vperm.xlu0 %1477, %v684_v35   ;;  %v430_v44 = vld [vmem:[%s2715_s2 + $0x8] sm:$0xff] }
  0xbf   :  { %v2079_v26 = vsel %vm380_vm13, %v430_v44, 0.0 }
  0xc0   :  { %v692_v36 = vmul.f32 1.442695, %v2079_v26  ;;  %v741_v7 = vmul.f32 10.0, %v2079_v26 }
  0xc1   :  { %v2038_v24 = vpop.permute.xlu1 %482  ;;  %v2040_v62 = vpop.permute.xlu0 %377 }
  0xc2   :  { %2723 = vst [vmem:[#allocation11_spill] sm:$0xff] %v2040_v62  ;;  %1142 = vperm.xlu1 %1478, %v685_v40   ;;  %942 = vperm.xlu0 %1477, %v658_v19   ;;  %v689_v40 = vmul.f32 %v1803_v59, %v1443_v45  ;;  %v662_v19 = vmul.f32 %v1793_v53, %v1418_v15  ;;  %v257_v59 = vld [vmem:[%s2714_s1 + $0x18] sm:$0xff] }
  0xc3   :  { %vm556_vm5 = vcmp.eq.s32.totalorder %v2144_v32, %v2038_v24 }
  0xc5   :  { %v2046_v4 = vpop.permute.xlu1 %488  ;;  %v2048_v0 = vpop.permute.xlu0 %485 }
  0xc6   :  { %947 = vperm.xlu1 %1478, %v659_v63   ;;  %551 = vperm.xlu0 %1477, %v1760_v43   ;;  %v2073_v43 = vsel %vm379_vm10, %v429_v10, 0.0  ;;  %v694_v63 = vmul.f32 1.442695, %v2103_v49  ;;  %vm557_vm6 = vcmp.eq.s32.totalorder %v2144_v32, %v2048_v0  ;;  %vm558_vm8 = vcmp.eq.s32.totalorder %v2144_v32, %v2046_v4 }
  0xc7   :  { %v690_v31 = vmul.f32 1.442695, %v2073_v43  ;;  %v740_v28 = vmul.f32 10.0, %v2073_v43 }
  0xc9   :  { %v2064_v2 = vpop.permute.xlu1 %494  ;;  %v2066_v8 = vpop.permute.xlu0 %491  ;;  %1483 = vpow2.f32 %v690_v31 }
  0xca   :  { %554 = vperm.xlu1 %1478, %v1774_v47   ;;  %1147 = vperm.xlu0 %1477, %v686_v39   ;;  %v432_v47 = vld [vmem:[%s2715_s2 + $0x18] sm:$0xff]  ;;  %1485 = vpow2.f32 %v692_v36  ;;  %v254_v39 = vld [vmem:[%s2714_s1] sm:$0xff]  ;;  %v2162_v36 = vsel %vm383_vm3, %v433_v9, 0.0  ;;  %vm560_vm12 = vcmp.eq.s32.totalorder %v2144_v32, %v2064_v2 }
  0xcb   :  { %v2111_v55 = vsel %vm382_vm2, %v432_v47, 0.0  ;;  %1487 = vpow2.f32 %v694_v63  ;;  %v404_v31 = vsel %vm379_vm10, %v254_v39, 0.0  ;;  %v434_v47 = vld [vmem:[%s2715_s2 + $0x28] sm:$0xff]  ;;  %v698_v63 = vmul.f32 1.442695, %v2162_v36 }
  0xcc   :  { %v743_v53 = vmul.f32 10.0, %v2111_v55  ;;  %v696_v60 = vmul.f32 1.442695, %v2111_v55  ;;  %vm559_vm10 = vcmp.eq.s32.totalorder %v2144_v32, %v2066_v8  ;;  %v260_v8 = vld [vmem:[%s2714_s1 + $0x30] sm:$0xff] }
  0xcd   :  { %v2087_v33 = vpop.permute.xlu1 %500  ;;  %v2089_v11 = vpop.permute.xlu0 %497 }
  0xce   :  { %1152 = vperm.xlu1 %1478, %v687_v27   ;;  %952 = vperm.xlu0 %1477, %v660_v21   ;;  %v2138_v27 = vsel %vm381_vm0, %v256_v58, 0.0  ;;  %v255_v21 = vld [vmem:[%s2714_s1 + $0x8] sm:$0xff]  ;;  %1489 = vpow2.f32 %v696_v60  ;;  %vm561_vm14 = vcmp.eq.s32.totalorder %v2144_v32, %v2089_v11  ;;  %vm562_vm0 = vcmp.eq.s32.totalorder %v2144_v32, %v2087_v33 }
  0xcf   :  { %v2147_v12 = vadd.f32 %v742_v23, %v2138_v27  ;;  %v992_v61 = vsub.f32 %v2103_v49, %v2138_v27  ;;  %v405_v1 = vsel %vm380_vm13, %v255_v21, 0.0  ;;  %v259_v58 = vld [vmem:[%s2714_s1 + $0x28] sm:$0xff]  ;;  %v2186_v49 = vsel %vm384_vm4, %v434_v47, 0.0  ;;  %v436_v47 = vld [vmem:[%s2715_s2 + $0x38] sm:$0xff] }
  0xd0   :  { %v2202_v21 = vsel %vm384_vm4, %v259_v58, 0.0  ;;  %v745_v24 = vmul.f32 10.0, %v2186_v49  ;;  %1491 = vpow2.f32 %v698_v63  ;;  %v744_v63 = vmul.f32 10.0, %v2162_v36  ;;  %v263_v11 = vld [vmem:[%s2714_s1 + $0x48] sm:$0xff] }
  0xd1   :  { %v2105_v35 = vpop.permute.xlu1 %506  ;;  %v2107_v52 = vpop.permute.xlu0 %503  ;;  %v792_v3 = vsub.f32 0.0, %v2147_v12  ;;  %v995_v4 = vsub.f32 %v2186_v49, %v2202_v21  ;;  %v1446_v27 = vsel %vm558_vm8, 1.0, %v1573_v54  ;;  %vm388_vm13 = vcmp.eq.s32.totalorder %v1968_v17, 1  ;;  %v440_v17 = vld [vmem:[%s2715_s2 + $0x58] sm:$0xff] }
  0xd2   :  { %1157 = vperm.xlu1 %1478, %v688_v38   ;;  %957 = vperm.xlu0 %1477, %v661_v16   ;;  %v765_v38 = vadd.f32 %v740_v28, %v404_v31  ;;  %v2154_v16 = vsel %vm382_vm2, %v257_v59, 0.0  ;;  %v991_v59 = vsub.f32 %v2079_v26, %v405_v1  ;;  %v1445_v26 = vsel %vm557_vm6, 1.0, %v1573_v54 }
  0xd3   :  { %v2167_v45 = vadd.f32 %v743_v53, %v2154_v16  ;;  %v1484_v23 = vpop.eup %1483  ;;  %v435_v53 = vld [vmem:[%s2715_s2 + $0x30] sm:$0xff]  ;;  %v2724_v13 = vsub.f32 %v2111_v55, %v2154_v16  ;;  %vm563_vm2 = vcmp.eq.s32.totalorder %v2144_v32, %v2107_v52  ;;  %vm564_vm4 = vcmp.eq.s32.totalorder %v2144_v32, %v2105_v35 }
  0xd4   :  { %v790_v39 = vsub.f32 0.0, %v765_v38  ;;  %v1486_v9 = vpop.eup %1485  ;;  %v700_v38 = vmul.f32 1.442695, %v2186_v49  ;;  %v2223_v0 = vsel %vm385_vm7, %v435_v53, 0.0  ;;  %v1451_v18 = vsel %vm563_vm2, 1.0, %v1573_v54  ;;  %v264_v52 = vld [vmem:[%s2714_s1 + $0x50] sm:$0xff] }
  0xd5   :  { %v2132_v10 = vpop.permute.xlu1 %512  ;;  %v2134_v44 = vpop.permute.xlu0 %509  ;;  %vm392_vm8 = vcmp.eq.s32.totalorder %v1986_v29, 1  ;;  %vm397_vm2 = vcmp.eq.s32.totalorder %v2014_v48, 1  ;;  %v450_v48 = vld [vmem:[%s2715_s2 + $0xa8] sm:$0xff] }
  0xd6   :  { %1162 = vperm.xlu1 %1478, %v689_v40   ;;  %962 = vperm.xlu0 %1477, %v662_v19   ;;  %v990_v40 = vsub.f32 %v2073_v43, %v404_v31  ;;  %v766_v19 = vadd.f32 %v741_v7, %v405_v1  ;;  %v258_v43 = vld [vmem:[%s2714_s1 + $0x20] sm:$0xff]  ;;  %v1444_v7 = vsel %vm556_vm5, 1.0, %v1573_v54  ;;  %1493 = vpow2.f32 %v700_v38 }
  0xd7   :  { %v2215_v5 = vsel %vm383_vm3, %v258_v43, 0.0  ;;  %v815_v6 = vmul.f32 %v1444_v7, %v790_v39  ;;  %v1488_v43 = vpop.eup %1487  ;;  %v702_v39 = vmul.f32 1.442695, %v2223_v0  ;;  %v261_v7 = vld [vmem:[%s2714_s1 + $0x38] sm:$0xff]  ;;  %vm390_vm3 = vcmp.eq.s32.totalorder %v1977_v22, 1 }
  0xd8   :  { %v791_v60 = vsub.f32 0.0, %v766_v19  ;;  %v1016_v19 = vmul.f32 %v1486_v9, %v991_v59  ;;  %v1015_v58 = vmul.f32 %v1484_v23, %v990_v40  ;;  %v994_v40 = vsub.f32 %v2162_v36, %v2215_v5  ;;  %v1216_v59 = vld [vmem:[#allocation2 + $0x8] sm:$0xff]  ;;  %v1215_v9 = vld [vmem:[#allocation2] sm:$0xff]  ;;  %v1490_v38 = vpop.eup %1489 }
  0xd9   :  { %v2171_v15 = vpop.permute.xlu1 %518  ;;  %v2173_v50 = vpop.permute.xlu0 %515  ;;  %v2238_v23 = vsel %vm386_vm9, %v436_v47, 0.0  ;;  %v437_v36 = vld [vmem:[%s2715_s2 + $0x40] sm:$0xff]  ;;  %v770_v47 = vadd.f32 %v745_v24, %v2202_v21  ;;  %1495 = vpow2.f32 %v702_v39  ;;  %vm391_vm5 = vcmp.eq.s32.totalorder %v1988_v30, 1 }
  0xda   :  { %v816_v1 = vmul.f32 %v1445_v26, %v791_v60  ;;  %v1017_v60 = vmul.f32 %v1488_v43, %v992_v61  ;;  %v2266_v43 = vsel %vm387_vm11, %v437_v36, 0.0  ;;  %v1492_v39 = vpop.eup %1491  ;;  %v1218_v36 = vld [vmem:[#allocation2 + $0x18] sm:$0xff]  ;;  %vm565_vm6 = vcmp.eq.s32.totalorder %v2144_v32, %v2134_v44 }
  0xdb   :  { %v1453_v25 = vsel %vm565_vm6, 1.0, %v1573_v54  ;;  %vm399_vm6 = vcmp.eq.s32.totalorder %v2022_v51, 1 }
  0xdd   :  { %v848_v12 = vpop.permute.xlu1 %847  ;;  %v843_v31 = vpop.permute.xlu0 %842 }
  0xde   :  { %v966_v62 = vmul.f32 %v848_v12, %v816_v1  ;;  %v965_v56 = vmul.f32 %v843_v31, %v815_v6  ;;  %v769_v1 = vadd.f32 %v744_v63, %v2215_v5  ;;  %v2258_v6 = vsel %vm386_vm9, %v261_v7, 0.0  ;;  %v438_v7 = vld [vmem:[%s2715_s2 + $0x48] sm:$0xff] }
  0xdf   :  { %v1018_v63 = vmul.f32 %v1490_v38, %v2724_v13  ;;  %v410_v38 = vsel %vm385_vm7, %v260_v8, 0.0  ;;  %v2292_v2 = vsel %vm388_vm13, %v438_v7, 0.0  ;;  %v997_v13 = vsub.f32 %v2238_v23, %v2258_v6 }
  0xe0   :  { %v996_v7 = vsub.f32 %v2223_v0, %v410_v38  ;;  %vm566_vm7 = vcmp.eq.s32.totalorder %v2144_v32, %v2132_v10  ;;  %vm393_vm9 = vcmp.eq.s32.totalorder %v1996_v37, 1  ;;  %v446_v37 = vld [vmem:[%s2715_s2 + $0x88] sm:$0xff] }
  0xe1   :  { %v1048_v53 = vpop.permute.xlu1 %1047  ;;  %v1043_v28 = vpop.permute.xlu0 %1042 }
  0xe2   :  { %v1166_v57 = vmul.f32 %v1048_v53, %v1016_v19  ;;  %v1165_v26 = vmul.f32 %v1043_v28, %v1015_v58  ;;  %v817_v28 = vmul.f32 %v1446_v27, %v792_v3  ;;  %v704_v19 = vmul.f32 1.442695, %v2238_v23  ;;  %v1217_v58 = vld [vmem:[#allocation2 + $0x10] sm:$0xff] }
  0xe3   :  { %v2725_v53 = vsub.f32 0.0, %v2167_v45 }
  0xe4   :  { %v1191_v12 = vadd.f32 %v1166_v57, %v966_v62  ;;  %v1190_v31 = vadd.f32 %v1165_v26, %v965_v56  ;;  %v1447_v57 = vsel %vm559_vm10, 1.0, %v1573_v54  ;;  %1497 = vpow2.f32 %v704_v19 }
  0xe5   :  { %v1053_v56 = vpop.permute.xlu1 %1052  ;;  %v853_v62 = vpop.permute.xlu0 %852  ;;  %v818_v26 = vmul.f32 %v1447_v57, %v2725_v53  ;;  %v1219_v53 = vld [vmem:[#allocation2 + $0x20] sm:$0xff]  ;;  %vm567_vm10 = vcmp.eq.s32.totalorder %v2144_v32, %v2173_v50 }
  0xe6   :  { %v1241_v61 = vadd.f32 %v1216_v59, %v1191_v12  ;;  %v1240_v3 = vadd.f32 %v1215_v9, %v1190_v31  ;;  %v1167_v27 = vmul.f32 %v1053_v56, %v1017_v60  ;;  %v967_v5 = vmul.f32 %v853_v62, %v817_v28 }
  0xe7   :  { %v794_v59 = vsub.f32 0.0, %v769_v1  ;;  %v746_v9 = vmul.f32 10.0, %v2223_v0  ;;  %v1448_v12 = vsel %vm560_vm12, 1.0, %v1573_v54  ;;  %v747_v28 = vmul.f32 10.0, %v2238_v23 }
  0xe8   :  { %1267 = vst.msk [vmem:[#allocation2 + $0x8] sm:$0xff] %vm26_vm1, %v1241_v61  ;;  %1266 = vst.msk [vmem:[#allocation2] sm:$0xff] %vm26_vm1, %v1240_v3  ;;  %v1192_v24 = vadd.f32 %v1167_v27, %v967_v5  ;;  %v706_v1 = vmul.f32 1.442695, %v2266_v43  ;;  %v1019_v56 = vmul.f32 %v1492_v39, %v994_v40  ;;  %v1494_v61 = vpop.eup %1493  ;;  %v795_v3 = vsub.f32 0.0, %v770_v47 }
  0xe9   :  { %v1058_v55 = vpop.permute.xlu1 %1057  ;;  %v858_v16 = vpop.permute.xlu0 %857  ;;  %v819_v62 = vmul.f32 %v1448_v12, %v794_v59  ;;  %v771_v27 = vadd.f32 %v746_v9, %v410_v38  ;;  %v1449_v5 = vsel %vm561_vm14, 1.0, %v1573_v54  ;;  %v1020_v59 = vmul.f32 %v1494_v61, %v995_v4  ;;  %v262_v12 = vld [vmem:[%s2714_s1 + $0x40] sm:$0xff]  ;;  %v1220_v38 = vld [vmem:[#allocation2 + $0x28] sm:$0xff] }
  0xea   :  { %v1242_v45 = vadd.f32 %v1217_v58, %v1192_v24  ;;  %v1168_v31 = vmul.f32 %v1058_v55, %v1018_v63  ;;  %v968_v60 = vmul.f32 %v858_v16, %v818_v26  ;;  %v772_v24 = vadd.f32 %v747_v28, %v2258_v6  ;;  %v1496_v6 = vpop.eup %1495 }
  0xeb   :  { %v708_v63 = vmul.f32 1.442695, %v2292_v2  ;;  %1499 = vpow2.f32 %v706_v1  ;;  %v2314_v26 = vsel %vm389_vm15, %v439_v14, 0.0  ;;  %v820_v23 = vmul.f32 %v1449_v5, %v795_v3 }
  0xec   :  { %1268 = vst.msk [vmem:[#allocation2 + $0x10] sm:$0xff] %vm26_vm1, %v1242_v45  ;;  %v1193_v57 = vadd.f32 %v1168_v31, %v968_v60  ;;  %v796_v9 = vsub.f32 0.0, %v771_v27  ;;  %v748_v55 = vmul.f32 10.0, %v2266_v43  ;;  %v1450_v16 = vsel %vm562_vm0, 1.0, %v1573_v54 }
  0xed   :  { %v1063_v19 = vpop.permute.xlu1 %1062  ;;  %v863_v58 = vpop.permute.xlu0 %862  ;;  %v2333_v0 = vsel %vm388_vm13, %v263_v11, 0.0  ;;  %1501 = vpow2.f32 %v708_v63  ;;  %v749_v60 = vmul.f32 10.0, %v2292_v2  ;;  %v710_v28 = vmul.f32 1.442695, %v2314_v26 }
  0xee   :  { %v1243_v40 = vadd.f32 %v1218_v36, %v1193_v57  ;;  %v1169_v8 = vmul.f32 %v1063_v19, %v1019_v56  ;;  %v969_v47 = vmul.f32 %v863_v58, %v819_v62  ;;  %v412_v33 = vsel %vm387_vm11, %v262_v12, 0.0  ;;  %v1498_v56 = vpop.eup %1497 }
  0xef   :  { %v1021_v36 = vmul.f32 %v1496_v6, %v996_v7  ;;  %v821_v57 = vmul.f32 %v1450_v16, %v796_v9  ;;  %v797_v62 = vsub.f32 0.0, %v772_v24  ;;  %v773_v61 = vadd.f32 %v748_v55, %v412_v33 }
  0xf0   :  { %1269 = vst.msk [vmem:[#allocation2 + $0x18] sm:$0xff] %vm26_vm1, %v1243_v40  ;;  %v1194_v39 = vadd.f32 %v1169_v8, %v969_v47  ;;  %v774_v58 = vadd.f32 %v749_v60, %v2333_v0  ;;  %v998_v40 = vsub.f32 %v2266_v43, %v412_v33  ;;  %1503 = vpow2.f32 %v710_v28  ;;  %v1221_v8 = vld [vmem:[#allocation2 + $0x30] sm:$0xff]  ;;  %v441_v43 = vld [vmem:[%s2715_s2 + $0x60] sm:$0xff] }
  0xf1   :  { %v1068_v45 = vpop.permute.xlu1 %1067  ;;  %v868_v31 = vpop.permute.xlu0 %867  ;;  %v2354_v47 = vsel %vm390_vm3, %v440_v17, 0.0  ;;  %v1022_v63 = vmul.f32 %v1498_v56, %v997_v13  ;;  %v414_v16 = vsel %vm389_vm15, %v264_v52, 0.0  ;;  %v999_v28 = vsub.f32 %v2292_v2, %v2333_v0  ;;  %v265_v2 = vld [vmem:[%s2714_s1 + $0x58] sm:$0xff] }
  0xf2   :  { %v1244_v49 = vadd.f32 %v1219_v53, %v1194_v39  ;;  %v1170_v21 = vmul.f32 %v1068_v45, %v1020_v59  ;;  %v970_v4 = vmul.f32 %v868_v31, %v820_v23  ;;  %v822_v53 = vmul.f32 %v1451_v18, %v797_v62  ;;  %v1222_v45 = vld [vmem:[#allocation2 + $0x38] sm:$0xff] }
  0xf3   :  { %v798_v39 = vsub.f32 0.0, %v773_v61  ;;  %v750_v59 = vmul.f32 10.0, %v2314_v26  ;;  %v1452_v23 = vsel %vm564_vm4, 1.0, %v1573_v54  ;;  %v712_v55 = vmul.f32 1.442695, %v2354_v47  ;;  %v1223_v61 = vld [vmem:[#allocation2 + $0x40] sm:$0xff] }
  0xf4   :  { %1270 = vst.msk [vmem:[#allocation2 + $0x20] sm:$0xff] %vm26_vm1, %v1244_v49  ;;  %v1195_v1 = vadd.f32 %v1170_v21, %v970_v4  ;;  %v2376_v31 = vsel %vm391_vm5, %v441_v43, 0.0  ;;  %v799_v60 = vsub.f32 0.0, %v774_v58  ;;  %v1455_v50 = vsel %vm567_vm10, 1.0, %v1573_v54 }
  0xf5   :  { %v1073_v3 = vpop.permute.xlu1 %1072  ;;  %v873_v27 = vpop.permute.xlu0 %872  ;;  %v823_v21 = vmul.f32 %v1452_v23, %v798_v39  ;;  %1505 = vpow2.f32 %v712_v55  ;;  %v714_v62 = vmul.f32 1.442695, %v2376_v31  ;;  %v752_v43 = vmul.f32 10.0, %v2376_v31  ;;  %v443_v23 = vld [vmem:[%s2715_s2 + $0x70] sm:$0xff] }
  0xf6   :  { %v1245_v14 = vadd.f32 %v1220_v38, %v1195_v1  ;;  %v1171_v5 = vmul.f32 %v1073_v3, %v1021_v36  ;;  %v971_v19 = vmul.f32 %v873_v27, %v821_v57  ;;  %v1500_v11 = vpop.eup %1499  ;;  %v775_v38 = vadd.f32 %v750_v59, %v414_v16 }
  0xf7   :  { %v1023_v49 = vmul.f32 %v1500_v11, %v998_v40  ;;  %v1502_v4 = vpop.eup %1501  ;;  %v824_v17 = vmul.f32 %v1453_v25, %v799_v60  ;;  %v751_v3 = vmul.f32 10.0, %v2354_v47  ;;  %v1000_v27 = vsub.f32 %v2314_v26, %v414_v16  ;;  %v1225_v16 = vld [vmem:[#allocation2 + $0x50] sm:$0xff] }
  0xf8   :  { %1271 = vst.msk [vmem:[#allocation2 + $0x28] sm:$0xff] %vm26_vm1, %v1245_v14  ;;  %v1196_v24 = vadd.f32 %v1171_v5, %v971_v19  ;;  %v1024_v0 = vmul.f32 %v1502_v4, %v999_v28  ;;  %v442_v14 = vld [vmem:[%s2715_s2 + $0x68] sm:$0xff]  ;;  %v1454_v5 = vsel %vm566_vm7, 1.0, %v1573_v54  ;;  %v800_v40 = vsub.f32 0.0, %v775_v38 }
  0xf9   :  { %v1078_v6 = vpop.permute.xlu1 %1077  ;;  %v878_v9 = vpop.permute.xlu0 %877  ;;  %v415_v26 = vsel %vm390_vm3, %v265_v2, 0.0  ;;  %1507 = vpow2.f32 %v714_v62  ;;  %vm568_vm11 = vcmp.eq.s32.totalorder %v2144_v32, %v2171_v15  ;;  %v444_v62 = vld [vmem:[%s2715_s2 + $0x78] sm:$0xff]  ;;  %vm394_vm12 = vcmp.eq.s32.totalorder %v1994_v34, 1 }
  0xfa   :  { %v1246_v13 = vadd.f32 %v1221_v8, %v1196_v24  ;;  %v1172_v7 = vmul.f32 %v1078_v6, %v1022_v63  ;;  %v972_v12 = vmul.f32 %v878_v9, %v822_v53  ;;  %v1504_v18 = vpop.eup %1503  ;;  %v1224_v63 = vld [vmem:[#allocation2 + $0x48] sm:$0xff]  ;;  %v2406_v53 = vsel %vm392_vm8, %v442_v14, 0.0  ;;  %v266_v9 = vld [vmem:[%s2714_s1 + $0x60] sm:$0xff] }
  0xfb   :  { %v1025_v10 = vmul.f32 %v1504_v18, %v1000_v27  ;;  %v825_v39 = vmul.f32 %v1454_v5, %v800_v40  ;;  %v776_v59 = vadd.f32 %v751_v3, %v415_v26  ;;  %v716_v55 = vmul.f32 1.442695, %v2406_v53  ;;  %v1226_v27 = vld [vmem:[#allocation2 + $0x58] sm:$0xff] }
  0xfc   :  { %1272 = vst.msk [vmem:[#allocation2 + $0x30] sm:$0xff] %vm26_vm1, %v1246_v13  ;;  %v1197_v35 = vadd.f32 %v1172_v7, %v972_v12  ;;  %v416_v4 = vsel %vm391_vm5, %v266_v9, 0.0  ;;  %v1456_v15 = vsel %vm568_vm11, 1.0, %v1573_v54  ;;  %v2447_v14 = vsel %vm394_vm12, %v444_v62, 0.0 }
  0xfd   :  { %v1083_v33 = vpop.permute.xlu1 %1082  ;;  %v883_v1 = vpop.permute.xlu0 %882  ;;  %v801_v38 = vsub.f32 0.0, %v776_v59  ;;  %v777_v25 = vadd.f32 %v752_v43, %v416_v4  ;;  %1509 = vpow2.f32 %v716_v55  ;;  %vm395_vm13 = vcmp.eq.s32.totalorder %v2005_v42, 1 }
  0xfe   :  { %v1247_v36 = vadd.f32 %v1222_v45, %v1197_v35  ;;  %v1173_v57 = vmul.f32 %v1083_v33, %v1023_v49  ;;  %v973_v56 = vmul.f32 %v883_v1, %v823_v21  ;;  %v2422_v45 = vsel %vm393_vm9, %v443_v23, 0.0 }
  0xff   :  { %v1506_v49 = vpop.eup %1505  ;;  %v1001_v21 = vsub.f32 %v2354_v47, %v415_v26  ;;  %v718_v1 = vmul.f32 1.442695, %v2422_v45  ;;  %v267_v47 = vld [vmem:[%s2714_s1 + $0x68] sm:$0xff]  ;;  %v826_v30 = vmul.f32 %v1455_v50, %v801_v38  ;;  %vm396_vm0 = vcmp.eq.s32.totalorder %v2003_v41, 1 }
 0x100   :  { %1273 = vst.msk [vmem:[#allocation2 + $0x38] sm:$0xff] %vm26_vm1, %v1247_v36  ;;  %v1198_v44 = vadd.f32 %v1173_v57, %v973_v56  ;;  %v753_v56 = vmul.f32 10.0, %v2406_v53  ;;  %v417_v3 = vsel %vm392_vm8, %v267_v47, 0.0  ;;  %v755_v50 = vmul.f32 10.0, %v2447_v14 }
 0x101   :  { %v1088_v19 = vpop.permute.xlu1 %1087  ;;  %v888_v58 = vpop.permute.xlu0 %887  ;;  %v1026_v36 = vmul.f32 %v1506_v49, %v1001_v21  ;;  %1511 = vpow2.f32 %v718_v1  ;;  %v269_v49 = vld [vmem:[%s2714_s1 + $0x78] sm:$0xff]  ;;  %vm398_vm5 = vcmp.eq.s32.totalorder %v2012_v46, 1 }
 0x102   :  { %v1248_v8 = vadd.f32 %v1223_v61, %v1198_v44  ;;  %v1174_v52 = vmul.f32 %v1088_v19, %v1024_v0  ;;  %v974_v24 = vmul.f32 %v888_v58, %v824_v17  ;;  %v802_v44 = vsub.f32 0.0, %v777_v25 }
 0x103   :  { %v1508_v57 = vpop.eup %1507  ;;  %v1002_v0 = vsub.f32 %v2376_v31, %v416_v4  ;;  %v778_v40 = vadd.f32 %v753_v56, %v417_v3  ;;  %v445_v31 = vld [vmem:[%s2715_s2 + $0x80] sm:$0xff]  ;;  %v447_v56 = vld [vmem:[%s2715_s2 + $0x90] sm:$0xff] }
 0x104   :  { %1274 = vst.msk [vmem:[#allocation2 + $0x40] sm:$0xff] %vm26_vm1, %v1248_v8  ;;  %v1199_v11 = vadd.f32 %v1174_v52, %v974_v24  ;;  %v827_v58 = vmul.f32 %v1456_v15, %v802_v44  ;;  %v754_v8 = vmul.f32 10.0, %v2422_v45  ;;  %v268_v24 = vld [vmem:[%s2714_s1 + $0x70] sm:$0xff]  ;;  %v2461_v59 = vsel %vm395_vm13, %v445_v31, 0.0 }
 0x105   :  { %v1093_v22 = vpop.permute.xlu1 %1092  ;;  %v893_v6 = vpop.permute.xlu0 %892  ;;  %v1027_v19 = vmul.f32 %v1508_v57, %v1002_v0  ;;  %v1228_v57 = vld [vmem:[#allocation2 + $0x68] sm:$0xff]  ;;  %v270_v0 = vld [vmem:[%s2714_s1 + $0x80] sm:$0xff] }
 0x106   :  { %v1249_v13 = vadd.f32 %v1224_v63, %v1199_v11  ;;  %v1175_v7 = vmul.f32 %v1093_v22, %v1025_v10  ;;  %v975_v12 = vmul.f32 %v893_v6, %v825_v39  ;;  %v720_v10 = vmul.f32 1.442695, %v2447_v14  ;;  %v1227_v39 = vld [vmem:[#allocation2 + $0x60] sm:$0xff] }
 0x107   :  { %v1510_v23 = vpop.eup %1509  ;;  %v1003_v22 = vsub.f32 %v2406_v53, %v417_v3  ;;  %v418_v6 = vsel %vm393_vm9, %v268_v24, 0.0  ;;  %vm400_vm9 = vcmp.eq.s32.totalorder %v2020_v20, 1 }
 0x108   :  { %1275 = vst.msk [vmem:[#allocation2 + $0x48] sm:$0xff] %vm26_vm1, %v1249_v13  ;;  %v1200_v35 = vadd.f32 %v1175_v7, %v975_v12  ;;  %v803_v12 = vsub.f32 0.0, %v778_v40  ;;  %v779_v55 = vadd.f32 %v754_v8, %v418_v6  ;;  %1513 = vpow2.f32 %v720_v10 }
 0x109   :  { %v898_v60 = vpop.permute.xlu1 %897  ;;  %v522_v28 = vpop.permute.xlu0 %521  ;;  %v1028_v21 = vmul.f32 %v1510_v23, %v1003_v22 }
 0x10a   :  { %v1250_v33 = vadd.f32 %v1225_v16, %v1200_v35  ;;  %v976_v17 = vmul.f32 %v898_v60, %v826_v30  ;;  %vm569_vm14 = vcmp.eq.s32.totalorder %v2144_v32, %v522_v28  ;;  %v722_v35 = vmul.f32 1.442695, %v2461_v59 }
 0x10b   :  { %v1457_v9 = vsel %vm569_vm14, 1.0, %v1573_v54  ;;  %v1512_v4 = vpop.eup %1511  ;;  %v804_v25 = vsub.f32 0.0, %v779_v55  ;;  %v419_v30 = vsel %vm394_vm12, %v269_v49, 0.0  ;;  %v1230_v49 = vld [vmem:[#allocation2 + $0x78] sm:$0xff] }
 0x10c   :  { %1276 = vst.msk [vmem:[#allocation2 + $0x50] sm:$0xff] %vm26_vm1, %v1250_v33  ;;  %v828_v53 = vmul.f32 %v1457_v9, %v803_v12  ;;  %v1004_v33 = vsub.f32 %v2422_v45, %v418_v6  ;;  %1515 = vpow2.f32 %v722_v35  ;;  %v1005_v31 = vsub.f32 %v2447_v14, %v419_v30  ;;  %v448_v6 = vld [vmem:[%s2715_s2 + $0x98] sm:$0xff] }
 0x10d   :  { %v525_v61 = vpop.permute.xlu1 %524  ;;  %v1098_v2 = vpop.permute.xlu0 %1097 }
 0x10e   :  { %v1176_v18 = vmul.f32 %v1098_v2, %v1026_v36  ;;  %vm570_vm15 = vcmp.eq.s32.totalorder %v2144_v32, %v525_v61  ;;  %v2485_v36 = vsel %vm396_vm0, %v446_v37, 0.0  ;;  %v1029_v15 = vmul.f32 %v1512_v4, %v1004_v33 }
 0x10f   :  { %v1458_v60 = vsel %vm570_vm15, 1.0, %v1573_v54  ;;  %v780_v61 = vadd.f32 %v755_v50, %v419_v30  ;;  %v756_v2 = vmul.f32 10.0, %v2461_v59  ;;  %v757_v23 = vmul.f32 10.0, %v2485_v36  ;;  %v1231_v30 = vld [vmem:[#allocation2 + $0x80] sm:$0xff] }
 0x110   :  { %v1201_v5 = vadd.f32 %v1176_v18, %v976_v17  ;;  %v829_v45 = vmul.f32 %v1458_v60, %v804_v25  ;;  %v449_v60 = vld [vmem:[%s2715_s2 + $0xa0] sm:$0xff] }
 0x111   :  { %v1103_v29 = vpop.permute.xlu1 %1102  ;;  %v903_v52 = vpop.permute.xlu0 %902  ;;  %v805_v8 = vsub.f32 0.0, %v780_v61 }
 0x112   :  { %v1251_v26 = vadd.f32 %v1226_v27, %v1201_v5  ;;  %v1177_v63 = vmul.f32 %v1103_v29, %v1027_v19  ;;  %v977_v11 = vmul.f32 %v903_v52, %v827_v58  ;;  %v724_v27 = vmul.f32 1.442695, %v2485_v36  ;;  %v1229_v19 = vld [vmem:[#allocation2 + $0x70] sm:$0xff]  ;;  %v1514_v40 = vpop.eup %1513 }
 0x113   :  { %v2499_v5 = vsel %vm397_vm2, %v447_v56, 0.0  ;;  %v420_v29 = vsel %vm395_vm13, %v270_v0, 0.0  ;;  %v1030_v42 = vmul.f32 %v1514_v40, %v1005_v31  ;;  %v1294_v31 = vld [vmem:[#allocation2] sm:$0xff] }
 0x114   :  { %1277 = vst.msk [vmem:[#allocation2 + $0x58] sm:$0xff] %vm26_vm1, %v1251_v26  ;;  %v1202_v43 = vadd.f32 %v1177_v63, %v977_v11  ;;  %v781_v63 = vadd.f32 %v756_v2, %v420_v29  ;;  %v726_v11 = vmul.f32 1.442695, %v2499_v5  ;;  %1517 = vpow2.f32 %v724_v27 }
 0x115   :  { %v908_v13 = vpop.permute.xlu1 %907  ;;  %v528_v7 = vpop.permute.xlu0 %527  ;;  %v1006_v22 = vsub.f32 %v2461_v59, %v420_v29  ;;  %v2523_v59 = vsel %vm398_vm5, %v448_v6, 0.0  ;;  %v758_v50 = vmul.f32 10.0, %v2499_v5 }
 0x116   :  { %v1252_v16 = vadd.f32 %v1227_v39, %v1202_v43  ;;  %v978_v1 = vmul.f32 %v908_v13, %v828_v53  ;;  %vm571_vm3 = vcmp.eq.s32.totalorder %v2144_v32, %v528_v7  ;;  %v271_v39 = vld [vmem:[%s2714_s1 + $0x88] sm:$0xff]  ;;  %v1516_v43 = vpop.eup %1515  ;;  %v806_v12 = vsub.f32 0.0, %v781_v63  ;;  %v1296_v63 = vld [vmem:[#allocation2 + $0x10] sm:$0xff] }
 0x117   :  { %v1459_v52 = vsel %vm571_vm3, 1.0, %v1573_v54  ;;  %1519 = vpow2.f32 %v726_v11  ;;  %v421_v35 = vsel %vm396_vm0, %v271_v39, 0.0  ;;  %v1031_v53 = vmul.f32 %v1516_v43, %v1006_v22  ;;  %v275_v43 = vld [vmem:[%s2714_s1 + $0xa8] sm:$0xff] }
 0x118   :  { %1278 = vst.msk [vmem:[#allocation2 + $0x60] sm:$0xff] %vm26_vm1, %v1252_v16  ;;  %v830_v14 = vmul.f32 %v1459_v52, %v805_v8  ;;  %v782_v4 = vadd.f32 %v757_v23, %v421_v35  ;;  %v1295_v8 = vld [vmem:[#allocation2 + $0x8] sm:$0xff]  ;;  %v1319_v22 = vsel %vm26_vm1, %v1294_v31, 0.0 }
 0x119   :  { %v531_v28 = vpop.permute.xlu1 %530  ;;  %v1108_v38 = vpop.permute.xlu0 %1107  ;;  %v1320_v23 = vsel %vm26_vm1, %v1295_v8, 0.0 }
 0x11a   :  { %v1178_v47 = vmul.f32 %v1108_v38, %v1028_v21  ;;  %vm572_vm4 = vcmp.eq.s32.totalorder %v2144_v32, %v531_v28  ;;  %v272_v38 = vld [vmem:[%s2714_s1 + $0x90] sm:$0xff] }
 0x11b   :  { %v1460_v9 = vsel %vm572_vm4, 1.0, %v1573_v54  ;;  %vm52_vm4 = vcmask 0  }
 0x11c   :  { %v1203_v62 = vadd.f32 %v1178_v47, %v978_v1  ;;  %v831_v21 = vmul.f32 %v1460_v9, %v806_v12  ;;  %v728_v47 = vmul.f32 1.442695, %v2523_v59  ;;  %v2726_v12 = vld [vmem:[#allocation10_spill] sm:$0xff]  ;;  %53 = vst.msk [vmem:[#allocation5] sm:$0x1] %vm52_vm4, %v1573_v54 }
 0x11d   :  { %v1113_v34 = vpop.permute.xlu1 %1112  ;;  %v913_v44 = vpop.permute.xlu0 %912  ;;  %vm401_vm10 = vcmp.eq.s32.totalorder %v2726_v12, 1 }
 0x11e   :  { %v1253_v17 = vadd.f32 %v1228_v57, %v1203_v62  ;;  %v1179_v18 = vmul.f32 %v1113_v34, %v1029_v15  ;;  %v979_v3 = vmul.f32 %v913_v44, %v829_v45  ;;  %v2537_v57 = vsel %vm399_vm6, %v449_v60, 0.0  ;;  %v1518_v62 = vpop.eup %1517 }
 0x11f   :  { %v1007_v15 = vsub.f32 %v2485_v36, %v421_v35  ;;  %v422_v45 = vsel %vm397_vm2, %v272_v38, 0.0  ;;  %v807_v44 = vsub.f32 0.0, %v782_v4  ;;  %1521 = vpow2.f32 %v728_v47  ;;  %v273_v36 = vld [vmem:[%s2714_s1 + $0x98] sm:$0xff]  ;;  %v1298_v38 = vld [vmem:[#allocation2 + $0x20] sm:$0xff] }
 0x120   :  { %1279 = vst.msk [vmem:[#allocation2 + $0x68] sm:$0xff] %vm26_vm1, %v1253_v17  ;;  %v1204_v58 = vadd.f32 %v1179_v18, %v979_v3  ;;  %v783_v0 = vadd.f32 %v758_v50, %v422_v45  ;;  %v730_v18 = vmul.f32 1.442695, %v2537_v57  ;;  %v1008_v40 = vsub.f32 %v2499_v5, %v422_v45  ;;  %v1232_v5 = vld [vmem:[#allocation2 + $0x88] sm:$0xff] }
 0x121   :  { %v918_v24 = vpop.permute.xlu1 %917  ;;  %v534_v26 = vpop.permute.xlu0 %533  ;;  %v423_v39 = vsel %vm398_vm5, %v273_v36, 0.0  ;;  %v760_v46 = vmul.f32 10.0, %v2537_v57  ;;  %v2586_v60 = vsel %vm400_vm9, %v275_v43, 0.0  ;;  %v1299_v45 = vld [vmem:[#allocation2 + $0x28] sm:$0xff]  ;;  %v1302_v43 = vld [vmem:[#allocation2 + $0x40] sm:$0xff] }
 0x122   :  { %v1254_v10 = vadd.f32 %v1229_v19, %v1204_v58  ;;  %v980_v55 = vmul.f32 %v918_v24, %v830_v14  ;;  %vm573_vm7 = vcmp.eq.s32.totalorder %v2144_v32, %v534_v26  ;;  %v1520_v3 = vpop.eup %1519  ;;  %v1032_v19 = vmul.f32 %v1518_v62, %v1007_v15 }
 0x123   :  { %v1461_v61 = vsel %vm573_vm7, 1.0, %v1573_v54  ;;  %v759_v58 = vmul.f32 10.0, %v2523_v59  ;;  %v808_v26 = vsub.f32 0.0, %v783_v0  ;;  %v2565_v14 = vsel %vm400_vm9, %v450_v48, 0.0  ;;  %v453_v48 = vld [vmem:[%s2715_s2 + $0xc0] sm:$0xff] }
 0x124   :  { %1280 = vst.msk [vmem:[#allocation2 + $0x70] sm:$0xff] %vm26_vm1, %v1254_v10  ;;  %v832_v27 = vmul.f32 %v1461_v61, %v807_v44  ;;  %1523 = vpow2.f32 %v730_v18  ;;  %v1009_v50 = vsub.f32 %v2523_v59, %v423_v39  ;;  %v761_v31 = vmul.f32 10.0, %v2565_v14 }
 0x125   :  { %v537_v13 = vpop.permute.xlu1 %536  ;;  %v1118_v7 = vpop.permute.xlu0 %1117 }
 0x126   :  { %v1180_v16 = vmul.f32 %v1118_v7, %v1030_v42  ;;  %vm574_vm8 = vcmp.eq.s32.totalorder %v2144_v32, %v537_v13  ;;  %v1033_v42 = vmul.f32 %v1520_v3, %v1008_v40  ;;  %v784_v13 = vadd.f32 %v759_v58, %v423_v39  ;;  %v451_v7 = vld [vmem:[%s2715_s2 + $0xb0] sm:$0xff] }
 0x127   :  { %v1462_v29 = vsel %vm574_vm8, 1.0, %v1573_v54  ;;  %v2595_v47 = vsel %vm401_vm10, %v451_v7, 0.0 }
 0x128   :  { %v1205_v37 = vadd.f32 %v1180_v16, %v980_v55  ;;  %v833_v9 = vmul.f32 %v1462_v29, %v808_v26  ;;  %v1322_v55 = vsel %vm26_vm1, %v1296_v63, 0.0  ;;  %v1297_v16 = vld [vmem:[#allocation2 + $0x18] sm:$0xff]  ;;  %v734_v3 = vmul.f32 1.442695, %v2595_v47 }
 0x129   :  { %v1123_v28 = vpop.permute.xlu1 %1122  ;;  %v923_v41 = vpop.permute.xlu0 %922  ;;  %v1324_v59 = vsel %vm26_vm1, %v1297_v16, 0.0  ;;  %v276_v16 = vld [vmem:[%s2714_s1 + $0xb0] sm:$0xff] }
 0x12a   :  { %v1255_v25 = vadd.f32 %v1230_v49, %v1205_v37  ;;  %v1181_v33 = vmul.f32 %v1123_v28, %v1031_v53  ;;  %v981_v1 = vmul.f32 %v923_v41, %v831_v21  ;;  %v274_v37 = vld [vmem:[%s2714_s1 + $0xa0] sm:$0xff]  ;;  %v732_v28 = vmul.f32 1.442695, %v2565_v14 }
 0x12b   :  { %v1321_v41 = vadd.f32 %v1320_v23, %v1319_v22  ;;  %v424_v62 = vsel %vm399_vm6, %v274_v37, 0.0 }
 0x12c   :  { %1281 = vst.msk [vmem:[#allocation2 + $0x78] sm:$0xff] %vm26_vm1, %v1255_v25  ;;  %v1206_v56 = vadd.f32 %v1181_v33, %v981_v1  ;;  %v1233_v25 = vld [vmem:[#allocation2 + $0x90] sm:$0xff]  ;;  %v452_v33 = vld [vmem:[%s2715_s2 + $0xb8] sm:$0xff]  ;;  %v785_v0 = vadd.f32 %v760_v46, %v424_v62  ;;  %1525 = vpow2.f32 %v732_v28  ;;  %v1010_v29 = vsub.f32 %v2537_v57, %v424_v62 }
 0x12d   :  { %v928_v2 = vpop.permute.xlu1 %927  ;;  %v2544_v34 = vpop.permute.xlu0 %539  ;;  %v2727_v1 = vld [vmem:[#allocation9_spill] sm:$0xff]  ;;  %v1323_v15 = vadd.f32 %v1322_v55, %v1321_v41  ;;  %1527 = vpow2.f32 %v734_v3  ;;  %v786_v55 = vadd.f32 %v761_v31, %v2586_v60  ;;  %v426_v62 = vsel %vm401_vm10, %v276_v16, 0.0 }
 0x12e   :  { %v1256_v17 = vadd.f32 %v1231_v30, %v1206_v56  ;;  %v982_v11 = vmul.f32 %v928_v2, %v832_v27  ;;  %vm575_vm11 = vcmp.eq.s32.totalorder %v2144_v32, %v2544_v34  ;;  %vm402_vm12 = vcmp.eq.s32.totalorder %v2727_v1, 1  ;;  %v1522_v30 = vpop.eup %1521  ;;  %v1300_v34 = vld [vmem:[#allocation2 + $0x30] sm:$0xff]  ;;  %v2728_v27 = vld [vmem:[#allocation11_spill] sm:$0xff] }
 0x12f   :  { %v809_v56 = vsub.f32 0.0, %v784_v13  ;;  %v1463_v61 = vsel %vm575_vm11, 1.0, %v1573_v54  ;;  %v2612_v51 = vsel %vm402_vm12, %v452_v33, 0.0  ;;  %v1325_v36 = vadd.f32 %v1324_v59, %v1323_v15  ;;  %v1524_v8 = vpop.eup %1523  ;;  %v1235_v59 = vld [vmem:[#allocation2 + $0xa0] sm:$0xff] }
 0x130   :  { %1282 = vst.msk [vmem:[#allocation2 + $0x80] sm:$0xff] %vm26_vm1, %v1256_v17  ;;  %v1326_v17 = vsel %vm26_vm1, %v1298_v38, 0.0  ;;  %vm403_vm14 = vcmp.eq.s32.totalorder %v2728_v27, 1  ;;  %v1034_v40 = vmul.f32 %v1522_v30, %v1009_v50  ;;  %v810_v39 = vsub.f32 0.0, %v785_v0  ;;  %v277_v50 = vld [vmem:[%s2714_s1 + $0xb8] sm:$0xff]  ;;  %v1306_v1 = vld [vmem:[#allocation2 + $0x60] sm:$0xff] }
 0x131   :  { %v2559_v52 = vpop.permute.xlu1 %542  ;;  %v1128_v24 = vpop.permute.xlu0 %1127  ;;  %v834_v58 = vmul.f32 %v1463_v61, %v809_v56  ;;  %v1330_v23 = vsel %vm26_vm1, %v1300_v34, 0.0  ;;  %v736_v22 = vmul.f32 1.442695, %v2612_v51  ;;  %v2633_v57 = vsel %vm403_vm14, %v453_v48, 0.0 }
 0x132   :  { %v1182_v10 = vmul.f32 %v1128_v24, %v1032_v19  ;;  %vm576_vm13 = vcmp.eq.s32.totalorder %v2144_v32, %v2559_v52  ;;  %v1328_v19 = vsel %vm26_vm1, %v1299_v45, 0.0  ;;  %v1327_v24 = vadd.f32 %v1326_v17, %v1325_v36 }
 0x133   :  { %v1464_v26 = vsel %vm576_vm13, 1.0, %v1573_v54  ;;  %v1035_v13 = vmul.f32 %v1524_v8, %v1010_v29  ;;  %1529 = vpow2.f32 %v736_v22  ;;  %v738_v33 = vmul.f32 1.442695, %v2633_v57 }
 0x134   :  { %v1207_v6 = vadd.f32 %v1182_v10, %v982_v11  ;;  %v1301_v10 = vld [vmem:[#allocation2 + $0x38] sm:$0xff]  ;;  %v1329_v52 = vadd.f32 %v1328_v19, %v1327_v24  ;;  %v835_v46 = vmul.f32 %v1464_v26, %v810_v39  ;;  %v1011_v56 = vsub.f32 %v2565_v14, %v2586_v60  ;;  %v1307_v39 = vld [vmem:[#allocation2 + $0x68] sm:$0xff] }
 0x135   :  { %v1133_v35 = vpop.permute.xlu1 %1132  ;;  %v933_v49 = vpop.permute.xlu0 %932  ;;  %v1332_v7 = vsel %vm26_vm1, %v1301_v10, 0.0  ;;  %v1305_v60 = vld [vmem:[#allocation2 + $0x58] sm:$0xff]  ;;  %v811_v3 = vsub.f32 0.0, %v786_v55  ;;  %1531 = vpow2.f32 %v738_v33  ;;  %v764_v26 = vmul.f32 10.0, %v2633_v57 }
 0x136   :  { %v1257_v53 = vadd.f32 %v1232_v5, %v1207_v6  ;;  %v1183_v21 = vmul.f32 %v1133_v35, %v1033_v42  ;;  %v983_v4 = vmul.f32 %v933_v49, %v833_v9  ;;  %v1234_v6 = vld [vmem:[#allocation2 + $0x98] sm:$0xff]  ;;  %v762_v35 = vmul.f32 10.0, %v2595_v47  ;;  %v1526_v61 = vpop.eup %1525 }
 0x137   :  { %v1036_v8 = vmul.f32 %v1526_v61, %v1011_v56  ;;  %v1340_v31 = vsel %vm26_vm1, %v1305_v60, 0.0  ;;  %v1528_v29 = vpop.eup %1527  ;;  %v1342_v22 = vsel %vm26_vm1, %v1306_v1, 0.0  ;;  %v1344_v16 = vsel %vm26_vm1, %v1307_v39, 0.0 }
 0x138   :  { %1283 = vst.msk [vmem:[#allocation2 + $0x88] sm:$0xff] %vm26_vm1, %v1257_v53  ;;  %v1208_v20 = vadd.f32 %v1183_v21, %v983_v4  ;;  %v1303_v53 = vld [vmem:[#allocation2 + $0x48] sm:$0xff]  ;;  %v1331_v21 = vadd.f32 %v1330_v23, %v1329_v52  ;;  %v1334_v4 = vsel %vm26_vm1, %v1302_v43, 0.0  ;;  %v787_v0 = vadd.f32 %v762_v35, %v426_v62  ;;  %v1308_v23 = vld [vmem:[#allocation2 + $0x70] sm:$0xff] }
 0x139   :  { %v938_v2 = vpop.permute.xlu1 %937  ;;  %v2605_v44 = vpop.permute.xlu0 %545  ;;  %v1336_v45 = vsel %vm26_vm1, %v1303_v53, 0.0 }
 0x13a   :  { %v1258_v18 = vadd.f32 %v1233_v25, %v1208_v20  ;;  %v984_v5 = vmul.f32 %v938_v2, %v834_v58  ;;  %vm577_vm15 = vcmp.eq.s32.totalorder %v2144_v32, %v2605_v44  ;;  %v763_v25 = vmul.f32 10.0, %v2612_v51  ;;  %v1304_v20 = vld [vmem:[#allocation2 + $0x50] sm:$0xff]  ;;  %v278_v44 = vld [vmem:[%s2714_s1 + $0xc0] sm:$0xff]  ;;  %s1574_s1 = smov [#allocation5]  }
 0x13b   :  { %v1333_v30 = vadd.f32 %v1332_v7, %v1331_v21  ;;  %v427_v2 = vsel %vm402_vm12, %v277_v50, 0.0  ;;  %v1465_v17 = vsel %vm577_vm15, 1.0, %v1573_v54  ;;  %v1338_v34 = vsel %vm26_vm1, %v1304_v20, 0.0  ;;  %s1386_s8 = sshll.u32 %s1574_s1, 4  ;;  %s1387_s8 = int_to_ptr.vmem [resolvable:$true] %s1386_s8 }
 0x13c   :  { %1284 = vst.msk [vmem:[#allocation2 + $0x90] sm:$0xff] %vm26_vm1, %v1258_v18  ;;  %v788_v48 = vadd.f32 %v763_v25, %v427_v2  ;;  %v1012_v58 = vsub.f32 %v2595_v47, %v426_v62  ;;  %v812_v24 = vsub.f32 0.0, %v787_v0  ;;  %v1013_v52 = vsub.f32 %v2612_v51, %v427_v2  ;;  %v1310_v25 = vld [vmem:[#allocation2 + $0x80] sm:$0xff]  ;;  %s1545_s10 = scalar_lea.vmem %s1387_s8, 16  ;;  %s1549_s11 = scalar_lea.vmem %s1387_s8, 32 }
 0x13d   :  { %v2627_v63 = vpop.permute.xlu1 %548  ;;  %v1138_v11 = vpop.permute.xlu0 %1137  ;;  %v1335_v12 = vadd.f32 %v1334_v4, %v1333_v30  ;;  %v1309_v4 = vld [vmem:[#allocation2 + $0x78] sm:$0xff]  ;;  %v1346_v51 = vsel %vm26_vm1, %v1308_v23, 0.0  ;;  %p1546_p5 = scmp.ne.s32.totalorder %s1387_s8, %s1545_s10  ;;  %p1550_p6 = scmp.lt.s32.totalorder %s1387_s8, %s1387_s8 }
 0x13e   :  { %v1184_v42 = vmul.f32 %v1138_v11, %v1034_v40  ;;  %vm578_vm0 = vcmp.eq.s32.totalorder %v2144_v32, %v2627_v63  ;;  %v836_v40 = vmul.f32 %v1465_v17, %v811_v3  ;;  %v1037_v7 = vmul.f32 %v1528_v29, %v1012_v58  ;;  %v1530_v35 = vpop.eup %1529  ;;  %v1238_v3 = vld [vmem:[#allocation2 + $0xb8] sm:$0xff]  ;;  %p1551_p7 = scmp.lt.s32.totalorder %s1549_s11, %s1545_s10 }
 0x13f   :  { %v1337_v19 = vadd.f32 %v1336_v45, %v1335_v12  ;;  %v1466_v11 = vsel %vm578_vm0, 1.0, %v1573_v54  ;;  %v1038_v20 = vmul.f32 %v1530_v35, %v1013_v52  ;;  %v1348_v56 = vsel %vm26_vm1, %v1309_v4, 0.0  ;;  %v1532_v62 = vpop.eup %1531  ;;  %v1311_v0 = vld [vmem:[#allocation2 + $0x88] sm:$0xff] }
 0x140   :  { %v1209_v9 = vadd.f32 %v1184_v42, %v984_v5  ;;  %v837_v55 = vmul.f32 %v1466_v11, %v812_v24  ;;  %v1350_v12 = vsel %vm26_vm1, %v1310_v25, 0.0  ;;  %v1239_v11 = vld [vmem:[#allocation2 + $0xc0] sm:$0xff]  ;;  %p1552_p8 = por %p1551_p7, %p1550_p6 }
 0x141   :  { %v1143_v49 = vpop.permute.xlu1 %1142  ;;  %v943_v37 = vpop.permute.xlu0 %942  ;;  %v1339_v5 = vadd.f32 %v1338_v34, %v1337_v19 }
 0x142   :  { %v1259_v28 = vadd.f32 %v1234_v6, %v1209_v9  ;;  %v1185_v41 = vmul.f32 %v1143_v49, %v1035_v13  ;;  %v985_v38 = vmul.f32 %v943_v37, %v835_v46  ;;  %v813_v6 = vsub.f32 0.0, %v788_v48  ;;  %v1236_v13 = vld [vmem:[#allocation2 + $0xa8] sm:$0xff]  ;;  %p1553_p9 = pnand %p1552_p8, %p1546_p5 }
 0x143   :  { %v428_v9 = vsel %vm403_vm14, %v278_v44, 0.0  ;;  %v1341_v63 = vadd.f32 %v1340_v31, %v1339_v5 }
 0x144   :  { %1285 = vst.msk [vmem:[#allocation2 + $0x98] sm:$0xff] %vm26_vm1, %v1259_v28  ;;  %v1210_v15 = vadd.f32 %v1185_v41, %v985_v38  ;;  %v789_v49 = vadd.f32 %v764_v26, %v428_v9  ;;  %v1237_v38 = vld [vmem:[#allocation2 + $0xb0] sm:$0xff]  ;;  %v1014_v45 = vsub.f32 %v2633_v57, %v428_v9  ;;  %v1352_v57 = vsel %vm26_vm1, %v1311_v0, 0.0 }
 0x145   :  { %v948_v18 = vpop.permute.xlu1 %947  ;;  %v552_v14 = vpop.permute.xlu0 %551  ;;  %v1343_v50 = vadd.f32 %v1342_v22, %v1341_v63 }
 0x146   :  { %v1260_v36 = vadd.f32 %v1235_v59, %v1210_v15  ;;  %v986_v42 = vmul.f32 %v948_v18, %v836_v40  ;;  %vm579_vm2 = vcmp.eq.s32.totalorder %v2144_v32, %v552_v14  ;;  %v814_v15 = vsub.f32 0.0, %v789_v49 }
 0x147   :  { %v1467_v37 = vsel %vm579_vm2, 1.0, %v1573_v54  ;;  %v1345_v33 = vadd.f32 %v1344_v16, %v1343_v50  ;;  %v1039_v1 = vmul.f32 %v1532_v62, %v1014_v45 }
 0x148   :  { %1286 = vst.msk [vmem:[#allocation2 + $0xa0] sm:$0xff] %vm26_vm1, %v1260_v36  ;;  %v838_v30 = vmul.f32 %v1467_v37, %v813_v6  ;;  %v1312_v36 = vld [vmem:[#allocation2 + $0x90] sm:$0xff] }
 0x149   :  { %v555_v47 = vpop.permute.xlu1 %554  ;;  %v1148_v10 = vpop.permute.xlu0 %1147  ;;  %v1347_v17 = vadd.f32 %v1346_v51, %v1345_v33  ;;  %v1354_v26 = vsel %vm26_vm1, %v1312_v36, 0.0 }
 0x14a   :  { %v1186_v43 = vmul.f32 %v1148_v10, %v1036_v8  ;;  %vm580_vm3 = vcmp.eq.s32.totalorder %v2144_v32, %v555_v47 }
 0x14b   :  { %v1468_v61 = vsel %vm580_vm3, 1.0, %v1573_v54  ;;  %v1349_v34 = vadd.f32 %v1348_v56, %v1347_v17  ;;  %v1313_v40 = vld [vmem:[#allocation2 + $0x98] sm:$0xff] }
 0x14c   :  { %v1211_v46 = vadd.f32 %v1186_v43, %v986_v42  ;;  %v839_v19 = vmul.f32 %v1468_v61, %v814_v15  ;;  %v1356_v5 = vsel %vm26_vm1, %v1313_v40, 0.0 }
 0x14d   :  { %v1153_v53 = vpop.permute.xlu1 %1152  ;;  %v953_v21 = vpop.permute.xlu0 %952  ;;  %v1351_v8 = vadd.f32 %v1350_v12, %v1349_v34 }
 0x14e   :  { %v1261_v27 = vadd.f32 %v1236_v13, %v1211_v46  ;;  %v1187_v28 = vmul.f32 %v1153_v53, %v1037_v7  ;;  %v987_v41 = vmul.f32 %v953_v21, %v837_v55 }
 0x14f   :  { %v1314_v47 = vld [vmem:[#allocation2 + $0xa0] sm:$0xff]  ;;  %v1353_v10 = vadd.f32 %v1352_v57, %v1351_v8 }
 0x150   :  { %1287 = vst.msk [vmem:[#allocation2 + $0xa8] sm:$0xff] %vm26_vm1, %v1261_v27  ;;  %v1212_v59 = vadd.f32 %v1187_v28, %v987_v41  ;;  %v1358_v22 = vsel %vm26_vm1, %v1314_v47, 0.0 }
 0x151   :  { %v1158_v32 = vpop.permute.xlu1 %1157  ;;  %v958_v2 = vpop.permute.xlu0 %957  ;;  %v1355_v43 = vadd.f32 %v1354_v26, %v1353_v10 }
 0x152   :  { %v1262_v18 = vadd.f32 %v1237_v38, %v1212_v59  ;;  %v1188_v14 = vmul.f32 %v1158_v32, %v1038_v20  ;;  %v988_v60 = vmul.f32 %v958_v2, %v838_v30 }
 0x153   :  { %v1357_v52 = vadd.f32 %v1356_v5, %v1355_v43 }
 0x154   :  { %1288 = vst.msk [vmem:[#allocation2 + $0xb0] sm:$0xff] %vm26_vm1, %v1262_v18  ;;  %v1213_v48 = vadd.f32 %v1188_v14, %v988_v60 }
 0x155   :  { %v1163_v58 = vpop.permute.xlu1 %1162  ;;  %v963_v44 = vpop.permute.xlu0 %962  ;;  %v1359_v13 = vadd.f32 %v1358_v22, %v1357_v52 }
 0x156   :  { %v1263_v31 = vadd.f32 %v1238_v3, %v1213_v48  ;;  %v1189_v29 = vmul.f32 %v1163_v58, %v1039_v1  ;;  %v989_v24 = vmul.f32 %v963_v44, %v839_v19 }
 0x157   :  { %v1315_v42 = vld [vmem:[#allocation2 + $0xa8] sm:$0xff] }
 0x158   :  { %1289 = vst.msk [vmem:[#allocation2 + $0xb8] sm:$0xff] %vm26_vm1, %v1263_v31  ;;  %v1214_v39 = vadd.f32 %v1189_v29, %v989_v24  ;;  %v1360_v9 = vsel %vm26_vm1, %v1315_v42, 0.0 }
 0x159   :  { %v1361_v7 = vadd.f32 %v1360_v9, %v1359_v13 }
 0x15a   :  { %v1264_v23 = vadd.f32 %v1239_v11, %v1214_v39 }
 0x15b   :  { %v1316_v6 = vld [vmem:[#allocation2 + $0xb0] sm:$0xff] }
 0x15c   :  { %1290 = vst.msk [vmem:[#allocation2 + $0xc0] sm:$0xff] %vm26_vm1, %v1264_v23  ;;  %v1362_v63 = vsel %vm26_vm1, %v1316_v6, 0.0 }
 0x15d   :  { %v1363_v16 = vadd.f32 %v1362_v63, %v1361_v7 }
 0x15f   :  { %v1317_v46 = vld [vmem:[#allocation2 + $0xb8] sm:$0xff] }
 0x160   :  { %v1364_v55 = vsel %vm26_vm1, %v1317_v46, 0.0 }
 0x161   :  { %v1365_v49 = vadd.f32 %v1364_v55, %v1363_v16 }
 0x163   :  { %v1318_v35 = vld [vmem:[#allocation2 + $0xc0] sm:$0xff] }
 0x164   :  { %v1366_v37 = vsel %vm26_vm1, %v1318_v35, 0.0 }
 0x165   :  { %v1367_v53 = vadd.f32 %v1366_v37, %v1365_v49 }
 0x167   :  { %1368 = vadd.xlane.f32.xlu0 %v1367_v53 }
 0x1f4   :  { %v1369_v21 = vpop.xlane.xlu0 %1368 }
 0x1f5   :  { %v1370_v4 = vrot.slane %v1369_v21, 4 }
 0x1f7   :  { %v1371_v50 = vadd.f32 %v1370_v4, %v1369_v21 }
 0x1f9   :  { %v1372_v51 = vrot.slane %v1371_v50, 2 }
 0x1fb   :  { %v1373_v27 = vadd.f32 %v1372_v51, %v1371_v50 }
 0x1fd   :  { %v1374_v28 = vrot.slane %v1373_v27, 1 }
 0x1ff   :  { %v1375_v41 = vadd.f32 %v1374_v28, %v1373_v27 }
 0x201   :  { %1471 = vpush %v1375_v41 }
 0x232   :  { %s1472_s9 = spop %1471 }
 0x233   :  { %v1377_v38 = vstv %s1472_s9 }
 0x234   :  { %1379 = vst.msk [vmem:[#allocation5] sm:$0x1] %vm52_vm4, %v1377_v38 }
 0x235   :  { %1556 = shalt.err (!%p1553_p9)
}
 0x236   :  { %s1557_s14 = scalar_lea.hbm %s2717_s4, 16 }
 0x237   :  { %p1558_p10 = scmp.ne.s32.totalorder %s2717_s4, %s1557_s14  ;;  %p1561_p11 = scmp.lt.u32.totalorder %s1557_s14, %s2717_s4 }
 0x239   :  { %p1563_p12 = pnand %p1561_p11, %p1558_p10 }
 0x23b   :  { %1566 = shalt.err (!%p1563_p12)
}
 0x23c   :  { %1389 = dma.vmem_to_hbm [thread:$0]  %s1387_s8, 16, %s2717_s4, [#allocation6]  }
 0x23d   :  { %1569 = dma.done.wait [#allocation6], 16  }
 0x23e   :  { %1570 = vsyncadd [#allocation6], 4294967280 }
 0x23f   :  { %1393 = vsyncpa [#allocation6], 1 }

</bundles_post_ra>
